<compile_context>
chip_gen: v7x
topology: tpu7x:2x2x1
jax: 0.10.0
libtpu: 0.0.40
codegen_flags: <defaults>
</compile_context>

<pallas_src>
import math

import jax
import jax.numpy as jnp
import numpy as np
from jax.experimental import pallas as pl
from jax.experimental.pallas import tpu as pltpu

D_MODEL = 32          # dmodel
N_HEADS = 8           # MultiHeadedCombination(8, dmodel)
D_K = D_MODEL // N_HEADS
LN_EPS = 1e-6


# ------------------------------ fused GCNN kernel ------------------------------
def _gcnn_kernel(state_ref, src_ref, ids_ref, w_ref, p_ref, o_ref):
    # state_ref, src_ref : (N, D) f32     (one batch element)
    # ids_ref            : (N, 1) int32   (parent indices for this batch element)
    # w_ref              : (6, D, D) f32  stacked [W1, Wq, Wk, Wv, Wo, W2], each (in, out)
    # p_ref              : (8, D) f32     stacked [b1, bq, bk, bv, bo, b2, gamma, beta]
    x = state_ref[...]                              # (N, D)
    src = src_ref[...]                              # (N, D)
    ids = ids_ref[...]                              # (N, 1) int32
    n, d = x.shape

    p = p_ref[...]                                  # (8, D)
    b1, bq, bk = p[0:1], p[1:2], p[2:3]
    bv, bo, b2 = p[3:4], p[4:5], p[5:6]
    gamma, beta = p[6:7], p[7:8]

    # self.linear(src) for the whole slab (must exist before the parent gather)
    addstate = jnp.dot(src, w_ref[0], preferred_element_type=jnp.float32) + b1

    # pem[j, :] = addstate[ids[j], :]  as a one-hot matmul (stays on the MXU,
    # avoids any dynamic-gather lowering and any HBM round trip).
    lane_iota = jax.lax.broadcasted_iota(jnp.int32, (n, n), 1)      # source index
    onehot = (ids == lane_iota).astype(jnp.float32)                 # (dst, src)
    pem = jnp.dot(onehot, addstate, preferred_element_type=jnp.float32)

    # SublayerConnection.norm : LayerNorm (unbiased std, eps added to std)
    mean = jnp.mean(x, axis=-1, keepdims=True)
    diff = x - mean
    var = jnp.sum(diff * diff, axis=-1, keepdims=True) * (1.0 / (d - 1))
    inv = pl.reciprocal(jnp.sqrt(var) + LN_EPS)                     # EUP, not VALU divide
    xn = gamma * (diff * inv) + beta

    # MultiHeadedCombination projections (query = key = norm(state), value = pem)
    q = jnp.dot(xn, w_ref[1], preferred_element_type=jnp.float32) + bq
    k = jnp.dot(xn, w_ref[2], preferred_element_type=jnp.float32) + bk
    v = jnp.dot(pem, w_ref[3], preferred_element_type=jnp.float32) + bv

    # 2-way softmax over (q*k/sqrt(dk), q*v/sqrt(dk)) gating k vs v
    # == sigmoid gate (exactly): comb = k + sigmoid(sv - sk) * (v - k)
    scale = 1.0 / math.sqrt(D_K)
    g = jax.nn.sigmoid((q * v - q * k) * scale)
    comb = k + g * (v - k)

    co = jnp.dot(comb, w_ref[4], preferred_element_type=jnp.float32) + bo

    # residual (dropout p=0.1 is identity in eval mode) + linearSecond
    res = x + co
    o_ref[...] = jnp.dot(res, w_ref[5], preferred_element_type=jnp.float32) + b2


def gcnn_forward(params, state, left, inputad):
    B, N, D = state.shape
    src = left if left is not None else state
    ids = inputad.astype(jnp.int32).reshape(B, N, 1)

    row_spec = pl.BlockSpec((None, N, D), lambda b: (b, 0, 0))
    return pl.pallas_call(
        _gcnn_kernel,
        out_shape=jax.ShapeDtypeStruct((B, N, D), jnp.float32),
        grid_spec=pltpu.PrefetchScalarGridSpec(
            num_scalar_prefetch=0,
            grid=(B,),
            in_specs=[
                row_spec,                                           # state
                row_spec,                                           # src (left or state)
                pl.BlockSpec((None, N, 1), lambda b: (b, 0, 0)),    # parent indices
                pl.BlockSpec((6, D, D), lambda b: (0, 0, 0)),       # stacked weights
                pl.BlockSpec((8, D), lambda b: (0, 0)),             # stacked biases + LN
            ],
            out_specs=row_spec,
        ),
        compiler_params=pltpu.CompilerParams(dimension_semantics=("parallel",)),
    )(state, src, ids, params["w_stack"], params["p_stack"])


# ---------------------------- pure-JAX reference (check) -----------------------
def gcnn_ref(params, state, left, inputad):
    src = left if left is not None else state
    addstate = src @ params["w1_t"] + params["b1"]
    idx = inputad.astype(jnp.int32)
    pem = jnp.take_along_axis(addstate, idx[..., None], axis=1)
    x = state
    d = x.shape[-1]
    mean = x.mean(-1, keepdims=True)
    diff = x - mean
    std = jnp.sqrt((diff * diff).sum(-1, keepdims=True) / (d - 1))
    xn = params["gamma"] * diff / (std + LN_EPS) + params["beta"]
    q = xn @ params["wq_t"] + params["bq"]
    k = xn @ params["wk_t"] + params["bk"]
    v = pem @ params["wv_t"] + params["bv"]
    scale = 1.0 / math.sqrt(D_K)
    sk, sv = q * k * scale, q * v * scale
    m = jnp.maximum(sk, sv)
    ek, ev = jnp.exp(sk - m), jnp.exp(sv - m)
    comb = (ek * k + ev * v) / (ek + ev)
    co = comb @ params["wo_t"] + params["bo"]
    res = x + co
    return res @ params["w2_t"] + params["b2"]


def make_params(key, d):
    ks = jax.random.split(key, 12)

    def w(k):  # pre-transposed weight (in, out), small deterministic init
        return jax.random.normal(k, (d, d), jnp.float32) * 0.05

    def b(k):
        return jax.random.normal(k, (d,), jnp.float32) * 0.05

    params = {
        "w1_t": w(ks[0]), "b1": b(ks[6]),          # self.linear
        "wq_t": w(ks[1]), "bq": b(ks[7]),          # com.linears[0]
        "wk_t": w(ks[2]), "bk": b(ks[8]),          # com.linears[1]
        "wv_t": w(ks[3]), "bv": b(ks[9]),          # com.linears[2]
        "wo_t": w(ks[4]), "bo": b(ks[10]),         # com.linears[3]
        "w2_t": w(ks[5]), "b2": b(ks[11]),         # self.linearSecond
        "gamma": jnp.ones((d,), jnp.float32),      # LayerNorm a_2
        "beta": jnp.zeros((d,), jnp.float32),      # LayerNorm b_2
    }
    params["w_stack"] = jnp.stack([params["w1_t"], params["wq_t"], params["wk_t"],
                                   params["wv_t"], params["wo_t"], params["w2_t"]])
    params["p_stack"] = jnp.stack([params["b1"], params["bq"], params["bk"],
                                   params["bv"], params["bo"], params["b2"],
                                   params["gamma"], params["beta"]])
    return params


if __name__ == "__main__":
    B, N, D = 2, 128, D_MODEL
    key = jax.random.PRNGKey(0)
    kp, ks, kl, ki = jax.random.split(key, 4)

    params = make_params(kp, D)
    state = jax.random.normal(ks, (B, N, D), jnp.float32)
    left = jax.random.normal(kl, (B, N, D), jnp.float32)
    # inputad holds per-node parent indices (a float tensor that forward .long()'s)
    inputad = jax.random.randint(ki, (B, N), 0, N).astype(jnp.float32)

    out = gcnn_forward(params, state, left, inputad)
    jax.block_until_ready(out)

    ref = gcnn_ref(params, state, left, inputad)
    np.testing.assert_allclose(np.asarray(out), np.asarray(ref), rtol=2e-4, atol=2e-5)
    print("KERNEL_OK")
</pallas_src>

<mosaic_0001>
module attributes {stable_mosaic.version = 11 : i64} {
  func.func @_gcnn_kernel(%arg0: i32, %arg1: memref<1x128x32xf32, #tpu.memory_space<vmem>>, %arg2: memref<1x128x32xf32, #tpu.memory_space<vmem>>, %arg3: memref<1x128x1xi32, #tpu.memory_space<vmem>>, %arg4: memref<6x32x32xf32, #tpu.memory_space<vmem>>, %arg5: memref<8x32xf32, #tpu.memory_space<vmem>>, %arg6: memref<1x128x32xf32, #tpu.memory_space<vmem>>) attributes {dimension_semantics = [#tpu.dimension_semantics<parallel>], iteration_bounds = array<i64: 2>, scalar_prefetch = 0 : i64, scratch_operands = 0 : i64, tpu.core_type = #tpu.core_type<tc>, window_params = [{transform_indices = @transform_0, window_bounds = array<i64: 1, 128, 32>}, {transform_indices = @transform_1, window_bounds = array<i64: 1, 128, 32>}, {transform_indices = @transform_2, window_bounds = array<i64: 1, 128, 1>}, {pipeline_mode = #tpu.pipeline_mode<synchronous>, transform_indices = @transform_3, window_bounds = array<i64: 6, 32, 32>}, {pipeline_mode = #tpu.pipeline_mode<synchronous>, transform_indices = @transform_4, window_bounds = array<i64: 8, 32>}, {transform_indices = @transform_5, window_bounds = array<i64: 1, 128, 32>}]} {
    %c0 = arith.constant 0 : index
    %c0_0 = arith.constant 0 : index
    %c0_1 = arith.constant 0 : index
    %0 = vector.load %arg1[%c0, %c0_0, %c0_1] : memref<1x128x32xf32, #tpu.memory_space<vmem>>, vector<1x128x32xf32>
    %1 = vector.shape_cast %0 : vector<1x128x32xf32> to vector<128x32xf32>
    %c0_2 = arith.constant 0 : index
    %c0_3 = arith.constant 0 : index
    %c0_4 = arith.constant 0 : index
    %2 = vector.load %arg2[%c0_2, %c0_3, %c0_4] : memref<1x128x32xf32, #tpu.memory_space<vmem>>, vector<1x128x32xf32>
    %3 = vector.shape_cast %2 : vector<1x128x32xf32> to vector<128x32xf32>
    %c0_5 = arith.constant 0 : index
    %c0_6 = arith.constant 0 : index
    %c0_7 = arith.constant 0 : index
    %4 = vector.load %arg3[%c0_5, %c0_6, %c0_7] : memref<1x128x1xi32, #tpu.memory_space<vmem>>, vector<1x128x1xi32>
    %5 = vector.shape_cast %4 : vector<1x128x1xi32> to vector<128x1xi32>
    %c0_8 = arith.constant 0 : index
    %c0_9 = arith.constant 0 : index
    %6 = vector.load %arg5[%c0_8, %c0_9] : memref<8x32xf32, #tpu.memory_space<vmem>>, vector<8x32xf32>
    %7 = vector.extract_strided_slice %6 {offsets = [0, 0], sizes = [1, 32], strides = [1, 1]} : vector<8x32xf32> to vector<1x32xf32>
    %8 = vector.extract_strided_slice %6 {offsets = [1, 0], sizes = [1, 32], strides = [1, 1]} : vector<8x32xf32> to vector<1x32xf32>
    %9 = vector.extract_strided_slice %6 {offsets = [2, 0], sizes = [1, 32], strides = [1, 1]} : vector<8x32xf32> to vector<1x32xf32>
    %10 = vector.extract_strided_slice %6 {offsets = [3, 0], sizes = [1, 32], strides = [1, 1]} : vector<8x32xf32> to vector<1x32xf32>
    %11 = vector.extract_strided_slice %6 {offsets = [4, 0], sizes = [1, 32], strides = [1, 1]} : vector<8x32xf32> to vector<1x32xf32>
    %12 = vector.extract_strided_slice %6 {offsets = [5, 0], sizes = [1, 32], strides = [1, 1]} : vector<8x32xf32> to vector<1x32xf32>
    %13 = vector.extract_strided_slice %6 {offsets = [6, 0], sizes = [1, 32], strides = [1, 1]} : vector<8x32xf32> to vector<1x32xf32>
    %14 = vector.extract_strided_slice %6 {offsets = [7, 0], sizes = [1, 32], strides = [1, 1]} : vector<8x32xf32> to vector<1x32xf32>
    %c0_10 = arith.constant 0 : index
    %c0_11 = arith.constant 0 : index
    %c0_12 = arith.constant 0 : index
    %15 = vector.load %arg4[%c0_10, %c0_11, %c0_12] : memref<6x32x32xf32, #tpu.memory_space<vmem>>, vector<1x32x32xf32>
    %16 = vector.shape_cast %15 : vector<1x32x32xf32> to vector<32x32xf32>
    %cst = arith.constant dense<0.000000e+00> : vector<128x32xf32>
    %17 = tpu.matmul %3, %16, %cst {dimension_numbers = #tpu.dot_dimension_numbers<[1], [0], [0], [1], [0, 0, 1, 1], [], []>} : vector<128x32xf32>, vector<32x32xf32>, vector<128x32xf32> -> vector<128x32xf32>
    %18 = vector.broadcast %7 : vector<1x32xf32> to vector<128x32xf32>
    %19 = arith.addf %17, %18 : vector<128x32xf32>
    %20 = tpu.iota {dimensions = array<i32: 1>} : vector<128x128xi32>
    %21 = vector.broadcast %5 : vector<128x1xi32> to vector<128x128xi32>
    %22 = arith.cmpi eq, %21, %20 : vector<128x128xi32>
    %23 = arith.extui %22 : vector<128x128xi1> to vector<128x128xi32>
    %24 = arith.sitofp %23 : vector<128x128xi32> to vector<128x128xf32>
    %cst_13 = arith.constant dense<0.000000e+00> : vector<128x32xf32>
    %25 = tpu.matmul %24, %19, %cst_13 {dimension_numbers = #tpu.dot_dimension_numbers<[1], [0], [0], [1], [0, 0, 1, 1], [], []>} : vector<128x128xf32>, vector<128x32xf32>, vector<128x32xf32> -> vector<128x32xf32>
    %cst_14 = arith.constant dense<0.000000e+00> : vector<128xf32>
    %26 = vector.multi_reduction <add>, %1, %cst_14 [1] : vector<128x32xf32> to vector<128xf32>
    %27 = vector.shape_cast %26 : vector<128xf32> to vector<128x1xf32>
    %cst_15 = arith.constant 3.200000e+01 : f32
    %28 = vector.broadcast %cst_15 : f32 to vector<128x1xf32>
    %29 = arith.divf %27, %28 : vector<128x1xf32>
    %30 = vector.broadcast %29 : vector<128x1xf32> to vector<128x32xf32>
    %31 = arith.subf %1, %30 : vector<128x32xf32>
    %32 = arith.mulf %31, %31 : vector<128x32xf32>
    %cst_16 = arith.constant dense<0.000000e+00> : vector<128xf32>
    %33 = vector.multi_reduction <add>, %32, %cst_16 [1] : vector<128x32xf32> to vector<128xf32>
    %34 = vector.shape_cast %33 : vector<128xf32> to vector<128x1xf32>
    %cst_17 = arith.constant 0.0322580636 : f32
    %35 = vector.broadcast %cst_17 : f32 to vector<128x1xf32>
    %36 = arith.mulf %34, %35 : vector<128x1xf32>
    %37 = math.sqrt %36 : vector<128x1xf32>
    %cst_18 = arith.constant 9.99999997E-7 : f32
    %38 = vector.broadcast %cst_18 : f32 to vector<128x1xf32>
    %39 = arith.addf %37, %38 : vector<128x1xf32>
    %40 = tpu.reciprocal %39 : vector<128x1xf32> -> vector<128x1xf32>
    %41 = vector.broadcast %40 : vector<128x1xf32> to vector<128x32xf32>
    %42 = arith.mulf %31, %41 : vector<128x32xf32>
    %43 = vector.broadcast %13 : vector<1x32xf32> to vector<128x32xf32>
    %44 = arith.mulf %43, %42 : vector<128x32xf32>
    %45 = vector.broadcast %14 : vector<1x32xf32> to vector<128x32xf32>
    %46 = arith.addf %44, %45 : vector<128x32xf32>
    %c1 = arith.constant 1 : index
    %c0_19 = arith.constant 0 : index
    %c0_20 = arith.constant 0 : index
    %47 = vector.load %arg4[%c1, %c0_19, %c0_20] : memref<6x32x32xf32, #tpu.memory_space<vmem>>, vector<1x32x32xf32>
    %48 = vector.shape_cast %47 : vector<1x32x32xf32> to vector<32x32xf32>
    %cst_21 = arith.constant dense<0.000000e+00> : vector<128x32xf32>
    %49 = tpu.matmul %46, %48, %cst_21 {dimension_numbers = #tpu.dot_dimension_numbers<[1], [0], [0], [1], [0, 0, 1, 1], [], []>} : vector<128x32xf32>, vector<32x32xf32>, vector<128x32xf32> -> vector<128x32xf32>
    %50 = vector.broadcast %8 : vector<1x32xf32> to vector<128x32xf32>
    %51 = arith.addf %49, %50 : vector<128x32xf32>
    %c2 = arith.constant 2 : index
    %c0_22 = arith.constant 0 : index
    %c0_23 = arith.constant 0 : index
    %52 = vector.load %arg4[%c2, %c0_22, %c0_23] : memref<6x32x32xf32, #tpu.memory_space<vmem>>, vector<1x32x32xf32>
    %53 = vector.shape_cast %52 : vector<1x32x32xf32> to vector<32x32xf32>
    %cst_24 = arith.constant dense<0.000000e+00> : vector<128x32xf32>
    %54 = tpu.matmul %46, %53, %cst_24 {dimension_numbers = #tpu.dot_dimension_numbers<[1], [0], [0], [1], [0, 0, 1, 1], [], []>} : vector<128x32xf32>, vector<32x32xf32>, vector<128x32xf32> -> vector<128x32xf32>
    %55 = vector.broadcast %9 : vector<1x32xf32> to vector<128x32xf32>
    %56 = arith.addf %54, %55 : vector<128x32xf32>
    %c3 = arith.constant 3 : index
    %c0_25 = arith.constant 0 : index
    %c0_26 = arith.constant 0 : index
    %57 = vector.load %arg4[%c3, %c0_25, %c0_26] : memref<6x32x32xf32, #tpu.memory_space<vmem>>, vector<1x32x32xf32>
    %58 = vector.shape_cast %57 : vector<1x32x32xf32> to vector<32x32xf32>
    %cst_27 = arith.constant dense<0.000000e+00> : vector<128x32xf32>
    %59 = tpu.matmul %25, %58, %cst_27 {dimension_numbers = #tpu.dot_dimension_numbers<[1], [0], [0], [1], [0, 0, 1, 1], [], []>} : vector<128x32xf32>, vector<32x32xf32>, vector<128x32xf32> -> vector<128x32xf32>
    %60 = vector.broadcast %10 : vector<1x32xf32> to vector<128x32xf32>
    %61 = arith.addf %59, %60 : vector<128x32xf32>
    %62 = arith.mulf %51, %61 : vector<128x32xf32>
    %63 = arith.mulf %51, %56 : vector<128x32xf32>
    %64 = arith.subf %62, %63 : vector<128x32xf32>
    %cst_28 = arith.constant 5.000000e-01 : f32
    %65 = vector.broadcast %cst_28 : f32 to vector<128x32xf32>
    %66 = arith.mulf %64, %65 : vector<128x32xf32>
    %67 = arith.negf %66 : vector<128x32xf32>
    %68 = math.exp %67 : vector<128x32xf32>
    %cst_29 = arith.constant 1.000000e+00 : f32
    %69 = vector.broadcast %cst_29 : f32 to vector<128x32xf32>
    %70 = arith.addf %69, %68 : vector<128x32xf32>
    %71 = arith.divf %69, %70 : vector<128x32xf32>
    %72 = arith.subf %61, %56 : vector<128x32xf32>
    %73 = arith.mulf %71, %72 : vector<128x32xf32>
    %74 = arith.addf %56, %73 : vector<128x32xf32>
    %c4 = arith.constant 4 : index
    %c0_30 = arith.constant 0 : index
    %c0_31 = arith.constant 0 : index
    %75 = vector.load %arg4[%c4, %c0_30, %c0_31] : memref<6x32x32xf32, #tpu.memory_space<vmem>>, vector<1x32x32xf32>
    %76 = vector.shape_cast %75 : vector<1x32x32xf32> to vector<32x32xf32>
    %cst_32 = arith.constant dense<0.000000e+00> : vector<128x32xf32>
    %77 = tpu.matmul %74, %76, %cst_32 {dimension_numbers = #tpu.dot_dimension_numbers<[1], [0], [0], [1], [0, 0, 1, 1], [], []>} : vector<128x32xf32>, vector<32x32xf32>, vector<128x32xf32> -> vector<128x32xf32>
    %78 = vector.broadcast %11 : vector<1x32xf32> to vector<128x32xf32>
    %79 = arith.addf %77, %78 : vector<128x32xf32>
    %80 = arith.addf %1, %79 : vector<128x32xf32>
    %c5 = arith.constant 5 : index
    %c0_33 = arith.constant 0 : index
    %c0_34 = arith.constant 0 : index
    %81 = vector.load %arg4[%c5, %c0_33, %c0_34] : memref<6x32x32xf32, #tpu.memory_space<vmem>>, vector<1x32x32xf32>
    %82 = vector.shape_cast %81 : vector<1x32x32xf32> to vector<32x32xf32>
    %cst_35 = arith.constant dense<0.000000e+00> : vector<128x32xf32>
    %83 = tpu.matmul %80, %82, %cst_35 {dimension_numbers = #tpu.dot_dimension_numbers<[1], [0], [0], [1], [0, 0, 1, 1], [], []>} : vector<128x32xf32>, vector<32x32xf32>, vector<128x32xf32> -> vector<128x32xf32>
    %84 = vector.broadcast %12 : vector<1x32xf32> to vector<128x32xf32>
    %85 = arith.addf %83, %84 : vector<128x32xf32>
    %c0_36 = arith.constant 0 : index
    %c0_37 = arith.constant 0 : index
    %c0_38 = arith.constant 0 : index
    %86 = vector.load %arg6[%c0_36, %c0_37, %c0_38] : memref<1x128x32xf32, #tpu.memory_space<vmem>>, vector<1x128x32xf32>
    %87 = vector.shape_cast %86 : vector<1x128x32xf32> to vector<128x32xf32>
    %88 = vector.shape_cast %85 : vector<128x32xf32> to vector<1x128x32xf32>
    tpu.vector_store %arg6[%c0_36, %c0_37, %c0_38], %88 {strides = array<i32>} : memref<1x128x32xf32, #tpu.memory_space<vmem>>, vector<1x128x32xf32>,
    return
  }
  func.func @transform_0(%arg0: i32) -> (i32, i32, i32) {
    %c0_i32 = arith.constant 0 : i32
    %c0_i32_0 = arith.constant 0 : i32
    %c0_i32_1 = arith.constant 0 : i32
    return %arg0, %c0_i32, %c0_i32_0 : i32, i32, i32
  }
  func.func @transform_1(%arg0: i32) -> (i32, i32, i32) {
    %c0_i32 = arith.constant 0 : i32
    %c0_i32_0 = arith.constant 0 : i32
    %c0_i32_1 = arith.constant 0 : i32
    return %arg0, %c0_i32, %c0_i32_0 : i32, i32, i32
  }
  func.func @transform_2(%arg0: i32) -> (i32, i32, i32) {
    %c0_i32 = arith.constant 0 : i32
    %c0_i32_0 = arith.constant 0 : i32
    %c0_i32_1 = arith.constant 0 : i32
    return %arg0, %c0_i32, %c0_i32_0 : i32, i32, i32
  }
  func.func @transform_3(%arg0: i32) -> (i32, i32, i32) {
    %c0_i32 = arith.constant 0 : i32
    %c0_i32_0 = arith.constant 0 : i32
    %c0_i32_1 = arith.constant 0 : i32
    %c0_i32_2 = arith.constant 0 : i32
    return %c0_i32, %c0_i32_0, %c0_i32_1 : i32, i32, i32
  }
  func.func @transform_4(%arg0: i32) -> (i32, i32) {
    %c0_i32 = arith.constant 0 : i32
    %c0_i32_0 = arith.constant 0 : i32
    %c0_i32_1 = arith.constant 0 : i32
    return %c0_i32, %c0_i32_0 : i32, i32
  }
  func.func @transform_5(%arg0: i32) -> (i32, i32, i32) {
    %c0_i32 = arith.constant 0 : i32
    %c0_i32_0 = arith.constant 0 : i32
    %c0_i32_1 = arith.constant 0 : i32
    return %arg0, %c0_i32, %c0_i32_0 : i32, i32, i32
  }
}

</mosaic_0001>

<bundles_post_ra>
// kernel: tpu_custom_call.1
= control target key start
LH: loop header
LB: loop body
LE: loop exit
PB: predicated region body
PF: predicated region fallthrough
CT: control target
= control target key end

     0   :  { %s3265_s18 = smov 0   ;;  %s4510_s0 = inlined_call_operand.vmem [shape: f32[2,128,32], index: 0, kind: input, shape index: {}]   ;;  %s4511_s1 = inlined_call_operand.vmem [shape: f32[2,128,32], index: 1, kind: input, shape index: {}]   ;;  %s4512_s2 = inlined_call_operand.vmem [shape: s32[2,128,1], index: 2, kind: input, shape index: {}]   ;;  %s4513_s3 = inlined_call_operand.vmem [shape: f32[6,32,32], index: 3, kind: input, shape index: {}]   ;;  %s4514_s4 = inlined_call_operand.vmem [shape: f32[8,32], index: 4, kind: input, shape index: {}]   ;;  %s4515_s5 = inlined_call_operand.vmem [shape: f32[2,128,32], index: 5, kind: output, shape index: {}]  }
   0x1 LB: > { %s2401_s19 = sadd.s32 4294967295, %s3231_s18   ;;  %p2405_p0 = scmp.ge.s32.totalorder %s3231_s18, 1  ;;  %s3231_s18 = sphi %s3265_s18, %s15_s18  }
   0x2   : > { %p207_p1 = scmp.lt.s32.totalorder %s3231_s18, 3 }
   0x4   : > { %p208_p2 = pnand %p2405_p0, %p207_p1 }
   0x6   : > { %211 = sbr.rel (%p208_p2) target bundleno = 1206 (0x4b6), region = 40 }
   0xd   : > { %v314_v0 = vld [vmem:[%s4513_s3] sm:$0xff]  ;;  %v315_v1 = vld [vmem:[%s4513_s3 + $0x8] sm:$0xff]  ;;  %v316_v2 = vld [vmem:[%s4513_s3 + $0x10] sm:$0xff]  ;;  %p245_p3 = scmp.lt.s32.totalorder %s2401_s19, 1  ;;  %v3233_v4 = vmov 0   ;;  %vm322_vm0 = vcmask 261120  }
   0xe   : > { %v2984_v3 = vpack.c.bf16 %v315_v1, %v314_v0  ;;  %3079 = vset.pattern.permute.xlu1 %v3233_v4  ;;  %3078 = vset.pattern.permute.xlu0 %v3233_v4  ;;  %v317_v5 = vld [vmem:[%s4513_s3 + $0x18] sm:$0xff] }
   0xf   : > { %v2988_v6 = vpack.c.bf16 %v317_v5, %v316_v2  ;;  %s4533_s19 = smov (!%p245_p3, %s2401_s19), 1 }
  0x10   : > { %2985 = vmatprep.subr.bf16.mxu0 %v2984_v3  ;;  %s3285_s28 = sshll.u32 %s4533_s19, 7 }
  0x11   : > { %2987 = vmatpush3.bf16.msra.mxu0 %v2984_v3  ;;  %s3291_s6 = scalar_lea.vmem %s4512_s2, %s3285_s28  ;;  %s3297_s9 = scalar_lea.vmem %s4511_s1, %s3285_s28 }
  0x12   : > { %2989 = vmatprep.subr.bf16.mxu0 %v2988_v6  ;;  %v299_v7 = vld [vmem:[%s3291_s6 + $0x10] sm:$0xff]  ;;  %v297_v8 = vld [vmem:[%s3291_s6] sm:$0xff]  ;;  %v300_v10 = vld [vmem:[%s3291_s6 + $0x18] sm:$0xff]  ;;  %s3351_s12 = scalar_lea.vmem %s4510_s0, %s3285_s28  ;;  %s4473_s15 = scalar_lea.vmem %s4515_s5, %s3285_s28 }
  0x13   : > { %v281_v9 = vld [vmem:[%s3297_s9] sm:$0xff]  ;;  %525 = vperm.xlu1 %3079, %v299_v7   ;;  %519 = vperm.xlu0 %3078, %v297_v8   ;;  %v298_v11 = vld [vmem:[%s3291_s6 + $0x8] sm:$0xff]  ;;  %v283_v13 = vld [vmem:[%s3297_s9 + $0x10] sm:$0xff]  ;;  %v318_v7 = vlaneseq }
  0x14   : > { %2744 = vmatprep.mubr.msk.f32.mxu0 %vm322_vm0, %v281_v9  ;;  %v282_v12 = vld [vmem:[%s3297_s9 + $0x8] sm:$0xff]  ;;  %v301_v15 = vld [vmem:[%s3291_s6 + $0x20] sm:$0xff]  ;;  %v284_v16 = vld [vmem:[%s3297_s9 + $0x18] sm:$0xff] }
  0x15   : > { %2991 = vmatpush3.bf16.msra.mxu0 %v2988_v6  ;;  %v302_v14 = vld [vmem:[%s3291_s6 + $0x28] sm:$0xff]  ;;  %v285_v17 = vld [vmem:[%s3297_s9 + $0x20] sm:$0xff]  ;;  %v304_v18 = vld [vmem:[%s3291_s6 + $0x38] sm:$0xff]  ;;  %v3433_v8 = vand.u32 127, %v318_v7 }
  0x16   : > { %v303_v19 = vld [vmem:[%s3291_s6 + $0x30] sm:$0xff]  ;;  %v286_v20 = vld [vmem:[%s3297_s9 + $0x28] sm:$0xff]  ;;  %v305_v23 = vld [vmem:[%s3291_s6 + $0x40] sm:$0xff] }
  0x17   : > { %528 = vperm.xlu1 %3079, %v300_v10   ;;  %522 = vperm.xlu0 %3078, %v298_v11   ;;  %v287_v21 = vld [vmem:[%s3297_s9 + $0x30] sm:$0xff]  ;;  %v306_v22 = vld [vmem:[%s3291_s6 + $0x48] sm:$0xff]  ;;  %v288_v24 = vld [vmem:[%s3297_s9 + $0x38] sm:$0xff]  ;;  %v3234_v11 = vmov 1.0  }
  0x18   : > { %2745 = vmatmul.mubr.msk.f32.vlgmr.msra.gmra.mrb[0].mxu0 %vm322_vm0, %v282_v12  ;;  %v289_v25 = vld [vmem:[%s3297_s9 + $0x40] sm:$0xff]  ;;  %v308_v26 = vld [vmem:[%s3291_s6 + $0x58] sm:$0xff]  ;;  %v307_v27 = vld [vmem:[%s3291_s6 + $0x50] sm:$0xff] }
  0x19   : > { %2747 = vmatprep.mubr.msk.f32.mxu0 %vm322_vm0, %v283_v13  ;;  %v290_v28 = vld [vmem:[%s3297_s9 + $0x48] sm:$0xff]  ;;  %v291_v29 = vld [vmem:[%s3297_s9 + $0x50] sm:$0xff]  ;;  %v309_v31 = vld [vmem:[%s3291_s6 + $0x60] sm:$0xff] }
  0x1a   : > { %v310_v30 = vld [vmem:[%s3291_s6 + $0x68] sm:$0xff]  ;;  %v292_v32 = vld [vmem:[%s3297_s9 + $0x58] sm:$0xff]  ;;  %v293_v33 = vld [vmem:[%s3297_s9 + $0x60] sm:$0xff] }
  0x1b   : > { %534 = vperm.xlu1 %3079, %v302_v14   ;;  %531 = vperm.xlu0 %3078, %v301_v15   ;;  %v312_v34 = vld [vmem:[%s3291_s6 + $0x78] sm:$0xff]  ;;  %v311_v35 = vld [vmem:[%s3291_s6 + $0x70] sm:$0xff]  ;;  %v294_v36 = vld [vmem:[%s3297_s9 + $0x68] sm:$0xff] }
  0x1c   : > { %2748 = vmatmul.mubr.msk.f32.gmra.mrb[2].mxu0 %vm322_vm0, %v284_v16  ;;  %v295_v37 = vld [vmem:[%s3297_s9 + $0x70] sm:$0xff]  ;;  %v296_v38 = vld [vmem:[%s3297_s9 + $0x78] sm:$0xff]  ;;  %v3354_v39 = vld [vmem:[%s3351_s12] sm:$0xff] }
  0x1d   : > { %2750 = vmatprep.mubr.msk.f32.mxu0 %vm322_vm0, %v285_v17  ;;  %v759_v40 = vsel %vm322_vm0, %v3354_v39, 0.0  ;;  %v3359_v41 = vld [vmem:[%s3351_s12 + $0x10] sm:$0xff]  ;;  %v3362_v42 = vld [vmem:[%s3351_s12 + $0x8] sm:$0xff]  ;;  %v3369_v45 = vld [vmem:[%s3351_s12 + $0x18] sm:$0xff] }
  0x1e   : > { %v765_v43 = vsel %vm322_vm0, %v3359_v41, 0.0  ;;  %v762_v44 = vsel %vm322_vm0, %v3362_v42, 0.0  ;;  %v3372_v46 = vld [vmem:[%s3351_s12 + $0x20] sm:$0xff]  ;;  %v768_v47 = vsel %vm322_vm0, %v3369_v45, 0.0  ;;  %v3379_v49 = vld [vmem:[%s3351_s12 + $0x28] sm:$0xff]  ;;  %v3382_v50 = vld [vmem:[%s3351_s12 + $0x30] sm:$0xff] }
  0x1f   : > { %540 = vperm.xlu1 %3079, %v304_v18   ;;  %537 = vperm.xlu0 %3078, %v303_v19   ;;  %v771_v48 = vsel %vm322_vm0, %v3372_v46, 0.0  ;;  %v774_v51 = vsel %vm322_vm0, %v3379_v49, 0.0  ;;  %v777_v52 = vsel %vm322_vm0, %v3382_v50, 0.0  ;;  %v3389_v53 = vld [vmem:[%s3351_s12 + $0x38] sm:$0xff]  ;;  %v3392_v54 = vld [vmem:[%s3351_s12 + $0x40] sm:$0xff]  ;;  %v3399_v57 = vld [vmem:[%s3351_s12 + $0x48] sm:$0xff] }
  0x20   : > { %2751 = vmatmul.mubr.msk.f32.gmra.mrb[4].mxu0 %vm322_vm0, %v286_v20  ;;  %v780_v55 = vsel %vm322_vm0, %v3389_v53, 0.0  ;;  %v783_v56 = vsel %vm322_vm0, %v3392_v54, 0.0  ;;  %v3402_v58 = vld [vmem:[%s3351_s12 + $0x50] sm:$0xff]  ;;  %v786_v59 = vsel %vm322_vm0, %v3399_v57, 0.0  ;;  %v3409_v61 = vld [vmem:[%s3351_s12 + $0x58] sm:$0xff]  ;;  %v3412_v62 = vld [vmem:[%s3351_s12 + $0x60] sm:$0xff] }
  0x21   : > { %2753 = vmatprep.mubr.msk.f32.mxu0 %vm322_vm0, %v287_v21  ;;  %v789_v60 = vsel %vm322_vm0, %v3402_v58, 0.0  ;;  %v792_v63 = vsel %vm322_vm0, %v3409_v61, 0.0  ;;  %v795_v0 = vsel %vm322_vm0, %v3412_v62, 0.0  ;;  %v3419_v1 = vld [vmem:[%s3351_s12 + $0x68] sm:$0xff]  ;;  %v3422_v2 = vld [vmem:[%s3351_s12 + $0x70] sm:$0xff]  ;;  %v3429_v5 = vld [vmem:[%s3351_s12 + $0x78] sm:$0xff] }
  0x22   : > { %v798_v3 = vsel %vm322_vm0, %v3419_v1, 0.0  ;;  %v801_v4 = vsel %vm322_vm0, %v3422_v2, 0.0  ;;  %v804_v6 = vsel %vm322_vm0, %v3429_v5, 0.0 }
  0x23   : > { %546 = vperm.xlu1 %3079, %v306_v22   ;;  %543 = vperm.xlu0 %3078, %v305_v23  }
  0x24   : > { %2754 = vmatmul.mubr.msk.f32.gmra.mrb[6].mxu0 %vm322_vm0, %v288_v24 }
  0x25   : > { %2756 = vmatprep.mubr.msk.f32.mxu0 %vm322_vm0, %v289_v25 }
  0x27   : > { %552 = vperm.xlu1 %3079, %v308_v26   ;;  %549 = vperm.xlu0 %3078, %v307_v27  }
  0x28   : > { %2757 = vmatmul.mubr.msk.f32.gmra.mrb[8].mxu0 %vm322_vm0, %v290_v28 }
  0x29   : > { %2759 = vmatprep.mubr.msk.f32.mxu0 %vm322_vm0, %v291_v29 }
  0x2b   : > { %558 = vperm.xlu1 %3079, %v310_v30   ;;  %555 = vperm.xlu0 %3078, %v309_v31   ;;  %v3500_v30 = vshrl.u32 %v318_v7, 7 }
  0x2c   : > { %2760 = vmatmul.mubr.msk.f32.gmra.mrb[10].mxu0 %vm322_vm0, %v292_v32 }
  0x2d   : > { %2762 = vmatprep.mubr.msk.f32.mxu0 %vm322_vm0, %v293_v33  ;;  %4520 = vst [vmem:[#allocation2_spill] sm:$0xff] %v3500_v30 }
  0x2f   : > { %564 = vperm.xlu1 %3079, %v312_v34   ;;  %561 = vperm.xlu0 %3078, %v311_v35  }
  0x30   : > { %2763 = vmatmul.mubr.msk.f32.gmra.mrb[12].mxu0 %vm322_vm0, %v294_v36 }
  0x31   : > { %2765 = vmatprep.mubr.msk.f32.mxu0 %vm322_vm0, %v295_v37 }
  0x34   : > { %2766 = vmatmul.mubr.msk.f32.gmra.mrb[14].mxu0 %vm322_vm0, %v296_v38 }
  0x4e   : > { %760 = vadd.xlane.f32.xlu0 %v759_v40 }
  0x52   : > { %766 = vadd.xlane.f32.xlu0 %v765_v43 }
  0x53   : > { %763 = vadd.xlane.f32.xlu1 %v762_v44  ;;  %v320_v44 = vsub.s32 0, %v3500_v30 }
  0x56   : > { %769 = vadd.xlane.f32.xlu0 %v768_v47 }
  0x57   : > { %772 = vadd.xlane.f32.xlu1 %v771_v48 }
  0x5a   : > { %775 = vadd.xlane.f32.xlu0 %v774_v51 }
  0x5b   : > { %778 = vadd.xlane.f32.xlu1 %v777_v52 }
  0x5e   : > { %781 = vadd.xlane.f32.xlu0 %v780_v55 }
  0x5f   : > { %784 = vadd.xlane.f32.xlu1 %v783_v56 }
  0x62   : > { %787 = vadd.xlane.f32.xlu0 %v786_v59 }
  0x63   : > { %790 = vadd.xlane.f32.xlu1 %v789_v60 }
  0x66   : > { %793 = vadd.xlane.f32.xlu0 %v792_v63 }
  0x67   : > { %796 = vadd.xlane.f32.xlu1 %v795_v0 }
  0x6a   : > { %799 = vadd.xlane.f32.xlu0 %v798_v3 }
  0x6b   : > { %802 = vadd.xlane.f32.xlu1 %v801_v4 }
  0x6e   : > { %805 = vadd.xlane.f32.xlu0 %v804_v6 }
  0x92   : > { %v3435_v9 = vpop.permute.xlu1 %525  ;;  %v520_v10 = vpop.permute.xlu0 %519 }
  0x93   : > { %vm568_vm1 = vcmp.eq.s32.totalorder %v3435_v9, %v3433_v8  ;;  %vm566_vm2 = vcmp.eq.s32.totalorder %v520_v10, %v3433_v8  ;;  %v2482_v9 = vld [vmem:[%s4513_s3 + $0x40] sm:$0xff] }
  0x94   : > { %2800 = vmatprep.mubr.msk.f32.mxu1 %vm566_vm2, %v3234_v11 }
  0x96   : > { %v3441_v12 = vpop.permute.xlu1 %528  ;;  %v3443_v13 = vpop.permute.xlu0 %522 }
  0x97   : > { %vm569_vm3 = vcmp.eq.s32.totalorder %v3441_v12, %v3433_v8  ;;  %vm567_vm4 = vcmp.eq.s32.totalorder %v3443_v13, %v3433_v8  ;;  %v2462_v13 = vld [vmem:[%s4513_s3 + $0x20] sm:$0xff]  ;;  %v2483_v12 = vld [vmem:[%s4513_s3 + $0x48] sm:$0xff] }
  0x9a   : > { %v3449_v14 = vpop.permute.xlu1 %534  ;;  %v3451_v15 = vpop.permute.xlu0 %531 }
  0x9b   : > { %vm571_vm5 = vcmp.eq.s32.totalorder %v3449_v14, %v3433_v8  ;;  %vm570_vm6 = vcmp.eq.s32.totalorder %v3451_v15, %v3433_v8  ;;  %v2464_v15 = vld [vmem:[%s4513_s3 + $0x30] sm:$0xff]  ;;  %v2465_v14 = vld [vmem:[%s4513_s3 + $0x38] sm:$0xff] }
  0x9e   : > { %v3457_v16 = vpop.permute.xlu1 %540  ;;  %v3459_v17 = vpop.permute.xlu0 %537 }
  0x9f   : > { %vm573_vm7 = vcmp.eq.s32.totalorder %v3457_v16, %v3433_v8  ;;  %vm572_vm8 = vcmp.eq.s32.totalorder %v3459_v17, %v3433_v8  ;;  %v2484_v17 = vld [vmem:[%s4513_s3 + $0x50] sm:$0xff]  ;;  %v2485_v16 = vld [vmem:[%s4513_s3 + $0x58] sm:$0xff] }
  0xa2   : > { %v3465_v18 = vpop.permute.xlu1 %546  ;;  %v3467_v19 = vpop.permute.xlu0 %543 }
  0xa3   : > { %vm575_vm9 = vcmp.eq.s32.totalorder %v3465_v18, %v3433_v8  ;;  %vm574_vm10 = vcmp.eq.s32.totalorder %v3467_v19, %v3433_v8  ;;  %v2502_v18 = vld [vmem:[%s4513_s3 + $0x60] sm:$0xff]  ;;  %v2503_v19 = vld [vmem:[%s4513_s3 + $0x68] sm:$0xff] }
  0xa6   : > { %v3473_v20 = vpop.permute.xlu1 %552  ;;  %v3475_v21 = vpop.permute.xlu0 %549 }
  0xa7   : > { %vm577_vm11 = vcmp.eq.s32.totalorder %v3473_v20, %v3433_v8  ;;  %vm576_vm12 = vcmp.eq.s32.totalorder %v3475_v21, %v3433_v8  ;;  %v3710_v20 = vpack.c.bf16 %v2503_v19, %v2502_v18 }
  0xaa   : > { %v3481_v22 = vpop.permute.xlu1 %558  ;;  %v3483_v23 = vpop.permute.xlu0 %555 }
  0xab   : > { %vm579_vm13 = vcmp.eq.s32.totalorder %v3481_v22, %v3433_v8  ;;  %vm578_vm14 = vcmp.eq.s32.totalorder %v3483_v23, %v3433_v8 }
  0xae   : > { %v3489_v24 = vpop.permute.xlu1 %564  ;;  %v3491_v25 = vpop.permute.xlu0 %561 }
  0xaf   : > { %vm581_vm15 = vcmp.eq.s32.totalorder %v3489_v24, %v3433_v8  ;;  %vm580_vm2 = vcmp.eq.s32.totalorder %v3491_v25, %v3433_v8 }
  0xdb   : > { %v761_v26 = vpop.xlane.xlu0 %760 }
  0xdc   : > { %v808_v27 = vmul.f32 0.03125, %v761_v26 }
  0xde   : > { %v3498_v28 = vsub.f32 %v3354_v39, %v808_v27 }
  0xdf   : > { %v767_v29 = vpop.xlane.xlu0 %766 }
  0xe0   : > { %v810_v31 = vmul.f32 0.03125, %v767_v29  ;;  %v764_v32 = vpop.xlane.xlu1 %763  ;;  %v840_v33 = vmul.f32 %v3498_v28, %v3498_v28 }
  0xe1   : > { %v809_v34 = vmul.f32 0.03125, %v764_v32 }
  0xe2   : > { %v3505_v35 = vsub.f32 %v3359_v41, %v810_v31  ;;  %v856_v36 = vsel %vm322_vm0, %v840_v33, 0.0  ;;  %v3519_v41 = vld [vmem:[%s4514_s4] sm:$0xff] }
  0xe3   : > { %v3509_v37 = vsub.f32 %v3362_v42, %v809_v34  ;;  %857 = vadd.xlane.f32.xlu1 %v856_v36  ;;  %v770_v38 = vpop.xlane.xlu0 %769  ;;  %v3530_v63 = vrot.slane %v3519_v41, %v320_v44 }
  0xe4   : > { %v773_v39 = vpop.xlane.xlu1 %772  ;;  %v811_v40 = vmul.f32 0.03125, %v770_v38  ;;  %v842_v43 = vmul.f32 %v3505_v35, %v3505_v35 }
  0xe5   : > { %v812_v47 = vmul.f32 0.03125, %v773_v39  ;;  %v841_v48 = vmul.f32 %v3509_v37, %v3509_v37 }
  0xe6   : > { %v3522_v42 = vsub.f32 %v3369_v45, %v811_v40  ;;  %v862_v51 = vsel %vm322_vm0, %v842_v43, 0.0 }
  0xe7   : > { %v3526_v52 = vsub.f32 %v3372_v46, %v812_v47  ;;  %863 = vadd.xlane.f32.xlu1 %v862_v51  ;;  %v859_v55 = vsel %vm322_vm0, %v841_v48, 0.0  ;;  %v776_v56 = vpop.xlane.xlu0 %775 }
  0xe8   : > { %v779_v59 = vpop.xlane.xlu1 %778  ;;  %860 = vadd.xlane.f32.xlu0 %v859_v55  ;;  %v813_v60 = vmul.f32 0.03125, %v776_v56  ;;  %v843_v0 = vmul.f32 %v3522_v42, %v3522_v42 }
  0xe9   : > { %v814_v45 = vmul.f32 0.03125, %v779_v59  ;;  %v844_v3 = vmul.f32 %v3526_v52, %v3526_v52 }
  0xea   : > { %v3537_v46 = vsub.f32 %v3379_v49, %v813_v60  ;;  %v865_v4 = vsel %vm322_vm0, %v843_v0, 0.0 }
  0xeb   : > { %v3541_v6 = vsub.f32 %v3382_v50, %v814_v45  ;;  %v2746_v7 = vpop.f32.mrb[0].mxu0  ;;  %v868_v10 = vsel %vm322_vm0, %v844_v3, 0.0  ;;  %v782_v26 = vpop.xlane.xlu0 %781 }
  0xec   : > { %v443_v27 = vadd.f32 %v2746_v7, %v3530_v63  ;;  %v437_v29 = vpop.f32.mrb[1].mxu0  ;;  %v785_v31 = vpop.xlane.xlu1 %784  ;;  %869 = vadd.xlane.f32.xlu1 %v868_v10  ;;  %866 = vadd.xlane.f32.xlu0 %v865_v4  ;;  %v815_v32 = vmul.f32 0.03125, %v782_v26  ;;  %v845_v49 = vmul.f32 %v3537_v46, %v3537_v46 }
  0xed   : > { %v438_v33 = vadd.f32 %v437_v29, %v3530_v63  ;;  %v816_v34 = vmul.f32 0.03125, %v785_v31  ;;  %v846_v50 = vmul.f32 %v3541_v6, %v3541_v6 }
  0xee   : > { %v3551_v36 = vsub.f32 %v3389_v53, %v815_v32  ;;  %v871_v38 = vsel %vm322_vm0, %v845_v49, 0.0 }
  0xef   : > { %v3555_v39 = vsub.f32 %v3392_v54, %v816_v34  ;;  %v2749_v40 = vpop.f32.mrb[2].mxu0  ;;  %v2992_v43 = vpack.c.bf16 %v443_v27, %v438_v33  ;;  %v874_v44 = vsel %vm322_vm0, %v846_v50, 0.0  ;;  %v788_v47 = vpop.xlane.xlu0 %787 }
  0xf0   : > { %v453_v48 = vadd.f32 %v2749_v40, %v3530_v63  ;;  %v447_v51 = vpop.f32.mrb[3].mxu0  ;;  %v791_v55 = vpop.xlane.xlu1 %790  ;;  %875 = vadd.xlane.f32.xlu1 %v874_v44  ;;  %872 = vadd.xlane.f32.xlu0 %v871_v38  ;;  %v817_v56 = vmul.f32 0.03125, %v788_v47  ;;  %v847_v53 = vmul.f32 %v3551_v36, %v3551_v36 }
  0xf1   : > { %v448_v59 = vadd.f32 %v447_v51, %v3530_v63  ;;  %2993 = vmatprep.subr.bf16.mxu1 %v2992_v43  ;;  %v818_v54 = vmul.f32 0.03125, %v791_v55  ;;  %v848_v60 = vmul.f32 %v3555_v39, %v3555_v39 }
  0xf2   : > { %v3565_v0 = vsub.f32 %v3399_v57, %v817_v56  ;;  %2995 = vmatpush3.bf16.msra.mxu1 %v2992_v43  ;;  %v877_v45 = vsel %vm322_vm0, %v847_v53, 0.0 }
  0xf3   : > { %v2996_v3 = vpack.c.bf16 %v453_v48, %v448_v59  ;;  %v3569_v4 = vsub.f32 %v3402_v58, %v818_v54  ;;  %v2752_v7 = vpop.f32.mrb[4].mxu0  ;;  %v880_v10 = vsel %vm322_vm0, %v848_v60, 0.0  ;;  %v794_v26 = vpop.xlane.xlu0 %793 }
  0xf4   : > { %v463_v27 = vadd.f32 %v2752_v7, %v3530_v63  ;;  %v457_v29 = vpop.f32.mrb[5].mxu0  ;;  %v797_v31 = vpop.xlane.xlu1 %796  ;;  %881 = vadd.xlane.f32.xlu1 %v880_v10  ;;  %878 = vadd.xlane.f32.xlu0 %v877_v45  ;;  %v819_v32 = vmul.f32 0.03125, %v794_v26  ;;  %v849_v57 = vmul.f32 %v3565_v0, %v3565_v0 }
  0xf5   : > { %v458_v49 = vadd.f32 %v457_v29, %v3530_v63  ;;  %2997 = vmatprep.subr.bf16.mxu1 %v2996_v3  ;;  %v820_v33 = vmul.f32 0.03125, %v797_v31  ;;  %v850_v58 = vmul.f32 %v3569_v4, %v3569_v4 }
  0xf6   : > { %v3579_v34 = vsub.f32 %v3409_v61, %v819_v32  ;;  %2999 = vmatpush3.bf16.msra.mxu1 %v2996_v3  ;;  %v883_v50 = vsel %vm322_vm0, %v849_v57, 0.0 }
  0xf7   : > { %v3000_v38 = vpack.c.bf16 %v463_v27, %v458_v49  ;;  %v3583_v40 = vsub.f32 %v3412_v62, %v820_v33  ;;  %v2755_v43 = vpop.f32.mrb[6].mxu0  ;;  %v886_v44 = vsel %vm322_vm0, %v850_v58, 0.0  ;;  %v800_v47 = vpop.xlane.xlu0 %799 }
  0xf8   : > { %v473_v48 = vadd.f32 %v2755_v43, %v3530_v63  ;;  %v467_v51 = vpop.f32.mrb[7].mxu0  ;;  %v803_v55 = vpop.xlane.xlu1 %802  ;;  %887 = vadd.xlane.f32.xlu1 %v886_v44  ;;  %884 = vadd.xlane.f32.xlu0 %v883_v50  ;;  %v821_v56 = vmul.f32 0.03125, %v800_v47  ;;  %v851_v61 = vmul.f32 %v3579_v34, %v3579_v34 }
  0xf9   : > { %v468_v53 = vadd.f32 %v467_v51, %v3530_v63  ;;  %3001 = vmatprep.subr.bf16.mxu1 %v3000_v38  ;;  %v822_v59 = vmul.f32 0.03125, %v803_v55  ;;  %v852_v62 = vmul.f32 %v3583_v40, %v3583_v40 }
  0xfa   : > { %v3593_v54 = vsub.f32 %v3419_v1, %v821_v56  ;;  %3003 = vmatpush3.bf16.msra.mxu1 %v3000_v38  ;;  %v889_v60 = vsel %vm322_vm0, %v851_v61, 0.0 }
  0xfb   : > { %v3004_v45 = vpack.c.bf16 %v473_v48, %v468_v53  ;;  %v3597_v3 = vsub.f32 %v3422_v2, %v822_v59  ;;  %v2758_v7 = vpop.f32.mrb[8].mxu0  ;;  %v892_v10 = vsel %vm322_vm0, %v852_v62, 0.0  ;;  %v806_v26 = vpop.xlane.xlu0 %805 }
  0xfc   : > { %v483_v27 = vadd.f32 %v2758_v7, %v3530_v63  ;;  %v477_v29 = vpop.f32.mrb[9].mxu0  ;;  %893 = vadd.xlane.f32.xlu1 %v892_v10  ;;  %890 = vadd.xlane.f32.xlu0 %v889_v60  ;;  %v823_v31 = vmul.f32 0.03125, %v806_v26  ;;  %v853_v1 = vmul.f32 %v3593_v54, %v3593_v54  ;;  %v3032_v26 = vpack.c.bf16 %v2483_v12, %v2482_v9 }
  0xfd   : > { %v478_v32 = vadd.f32 %v477_v29, %v3530_v63  ;;  %3005 = vmatprep.subr.bf16.mxu1 %v3004_v45  ;;  %v854_v2 = vmul.f32 %v3597_v3, %v3597_v3  ;;  %v3036_v29 = vpack.c.bf16 %v2485_v16, %v2484_v17 }
  0xfe   : > { %v3607_v57 = vsub.f32 %v3429_v5, %v823_v31  ;;  %3007 = vmatpush3.bf16.msra.mxu1 %v3004_v45  ;;  %v895_v49 = vsel %vm322_vm0, %v853_v1, 0.0 }
  0xff   : > { %v3008_v33 = vpack.c.bf16 %v483_v27, %v478_v32  ;;  %v2761_v58 = vpop.f32.mrb[10].mxu0  ;;  %v898_v50 = vsel %vm322_vm0, %v854_v2, 0.0  ;;  %v3028_v27 = vpack.c.bf16 %v2465_v14, %v2464_v15  ;;  %v1102_v32 = vsub.s32 7, %v3500_v30 }
 0x100   : > { %v493_v38 = vadd.f32 %v2761_v58, %v3530_v63  ;;  %v487_v43 = vpop.f32.mrb[11].mxu0  ;;  %899 = vadd.xlane.f32.xlu1 %v898_v50  ;;  %896 = vadd.xlane.f32.xlu0 %v895_v49  ;;  %v855_v44 = vmul.f32 %v3607_v57, %v3607_v57  ;;  %v2504_v58 = vld [vmem:[%s4513_s3 + $0x70] sm:$0xff]  ;;  %v2505_v50 = vld [vmem:[%s4513_s3 + $0x78] sm:$0xff] }
 0x101   : > { %v488_v47 = vadd.f32 %v487_v43, %v3530_v63  ;;  %3009 = vmatprep.subr.bf16.mxu1 %v3008_v33 }
 0x102   : > { %3011 = vmatpush3.bf16.msra.mxu1 %v3008_v33  ;;  %v901_v5 = vsel %vm322_vm0, %v855_v44, 0.0 }
 0x103   : > { %v3012_v48 = vpack.c.bf16 %v493_v38, %v488_v47  ;;  %v2764_v51 = vpop.f32.mrb[12].mxu0 }
 0x104   : > { %v503_v55 = vadd.f32 %v2764_v51, %v3530_v63  ;;  %v497_v56 = vpop.f32.mrb[13].mxu0  ;;  %902 = vadd.xlane.f32.xlu0 %v901_v5  ;;  %v3731_v5 = vrot.slane %v3519_v41, %v1102_v32 }
 0x105   : > { %v498_v61 = vadd.f32 %v497_v56, %v3530_v63  ;;  %3013 = vmatprep.subr.bf16.mxu1 %v3012_v48 }
 0x106   : > { %3015 = vmatpush3.bf16.msra.mxu1 %v3012_v48 }
 0x107   : > { %v3016_v53 = vpack.c.bf16 %v503_v55, %v498_v61  ;;  %v2767_v59 = vpop.f32.mrb[14].mxu0  ;;  %v3737_v61 = vpack.c.bf16 %v2505_v50, %v2504_v58 }
 0x108   : > { %v513_v62 = vadd.f32 %v2767_v59, %v3530_v63  ;;  %v507_v60 = vpop.f32.mrb[15].mxu0 }
 0x109   : > { %v508_v45 = vadd.f32 %v507_v60, %v3530_v63  ;;  %3017 = vmatprep.subr.bf16.mxu1 %v3016_v53  ;;  %v2463_v63 = vld [vmem:[%s4513_s3 + $0x28] sm:$0xff] }
 0x10a   : > { %3019 = vmatpush3.bf16.msra.mxu1 %v3016_v53  ;;  %v3024_v10 = vpack.c.bf16 %v2463_v63, %v2462_v13 }
 0x10b   : > { %v3020_v7 = vpack.c.bf16 %v513_v62, %v508_v45 }
 0x10c   : > { %3025 = vmatprep.subr.bf16.mxu0 %v3024_v10 }
 0x10d   : > { %3021 = vmatprep.subr.bf16.mxu1 %v3020_v7  ;;  %3027 = vmatpush3.bf16.msra.mxu0 %v3024_v10 }
 0x10e   : > { %3023 = vmatpush3.bf16.msra.mxu1 %v3020_v7  ;;  %3029 = vmatprep.subr.bf16.mxu0 %v3028_v27 }
 0x10f   : > { %3033 = vmatprep.subr.bf16.mxu1 %v3032_v26 }
 0x111   : > { %2801 = vmatmul.mubr.msk.f32.vlgmr.msra.gmra.mrb[0].mxu1 %vm567_vm4, %v3234_v11  ;;  %3031 = vmatpush3.bf16.msra.mxu0 %v3028_v27 }
 0x112   : > { %2803 = vmatprep.mubr.msk.f32.mxu1 %vm568_vm1, %v3234_v11  ;;  %3035 = vmatpush3.bf16.msra.mxu1 %v3032_v26 }
 0x113   : > { %3037 = vmatprep.subr.bf16.mxu1 %v3036_v29  ;;  %3041 = vmatprep.subr.bf16.mxu0 %v3710_v20 }
 0x115   : > { %2804 = vmatmul.mubr.msk.f32.gmra.mrb[2].mxu1 %vm569_vm3, %v3234_v11 }
 0x116   : > { %2806 = vmatprep.mubr.msk.f32.mxu1 %vm570_vm6, %v3234_v11  ;;  %3039 = vmatpush3.bf16.msra.mxu1 %v3036_v29 }
 0x119   : > { %2807 = vmatmul.mubr.msk.f32.gmra.mrb[4].mxu1 %vm571_vm5, %v3234_v11 }
 0x11a   : > { %2809 = vmatprep.mubr.msk.f32.mxu1 %vm572_vm8, %v3234_v11 }
 0x11d   : > { %2810 = vmatmul.mubr.msk.f32.gmra.mrb[6].mxu1 %vm573_vm7, %v3234_v11 }
 0x11e   : > { %2812 = vmatprep.mubr.msk.f32.mxu1 %vm574_vm10, %v3234_v11 }
 0x121   : > { %2813 = vmatmul.mubr.msk.f32.gmra.mrb[8].mxu1 %vm575_vm9, %v3234_v11 }
 0x122   : > { %2815 = vmatprep.mubr.msk.f32.mxu1 %vm576_vm12, %v3234_v11 }
 0x125   : > { %2816 = vmatmul.mubr.msk.f32.gmra.mrb[10].mxu1 %vm577_vm11, %v3234_v11 }
 0x126   : > { %2818 = vmatprep.mubr.msk.f32.mxu1 %vm578_vm14, %v3234_v11 }
 0x129   : > { %2819 = vmatmul.mubr.msk.f32.gmra.mrb[12].mxu1 %vm579_vm13, %v3234_v11 }
 0x12a   : > { %2821 = vmatprep.mubr.msk.f32.mxu1 %vm580_vm2, %v3234_v11 }
 0x12d   : > { %2822 = vmatmul.mubr.msk.f32.gmra.mrb[14].mxu1 %vm581_vm15, %v3234_v11  ;;  %v1082_v11 = vsub.s32 6, %v3500_v30 }
 0x12f   : > { %v3721_v33 = vrot.slane %v3519_v41, %v1082_v11 }
 0x170   : > { %v858_v21 = vpop.xlane.xlu1 %857 }
 0x171   : > { %v904_v22 = vmul.f32 0.032258064, %v858_v21 }
 0x173   : > { %3080 = vrsqrt.f32 %v904_v22  ;;  %vm922_vm1 = vcmp.eq.f32.partialorder %v904_v22, inf  ;;  %v925_v43 = vand.u32 2147483648, %v904_v22  ;;  %vm924_vm3 = vcmp.eq.f32.partialorder %v904_v22, 0.0 }
 0x174   : > { %v864_v23 = vpop.xlane.xlu1 %863 }
 0x175   : > { %v906_v25 = vmul.f32 0.032258064, %v864_v23  ;;  %v861_v31 = vpop.xlane.xlu0 %860 }
 0x176   : > { %v905_v8 = vmul.f32 0.032258064, %v861_v31 }
 0x177   : > { %3082 = vrsqrt.f32 %v906_v25  ;;  %vm936_vm4 = vcmp.eq.f32.partialorder %v906_v25, inf  ;;  %vm938_vm5 = vcmp.eq.f32.partialorder %v906_v25, 0.0  ;;  %v939_v56 = vand.u32 2147483648, %v906_v25 }
 0x178   : > { %3084 = vrsqrt.f32 %v905_v8  ;;  %vm929_vm6 = vcmp.eq.f32.partialorder %v905_v8, inf  ;;  %vm931_vm7 = vcmp.eq.f32.partialorder %v905_v8, 0.0  ;;  %v932_v41 = vand.u32 2147483648, %v905_v8 }
 0x179   : > { %v870_v24 = vpop.xlane.xlu1 %869  ;;  %v867_v1 = vpop.xlane.xlu0 %866 }
 0x17a   : > { %v3715_v2 = vmul.f32 0.032258064, %v870_v24  ;;  %v3717_v49 = vmul.f32 0.032258064, %v867_v1 }
 0x17c   : > { %3086 = vrsqrt.f32 %v3715_v2  ;;  %vm950_vm8 = vcmp.eq.f32.partialorder %v3715_v2, inf  ;;  %vm952_vm9 = vcmp.eq.f32.partialorder %v3715_v2, 0.0  ;;  %v953_v63 = vand.u32 2147483648, %v3715_v2 }
 0x17d   : > { %v3081_v38 = vpop.eup %3080  ;;  %3088 = vrsqrt.f32 %v3717_v49  ;;  %v876_v44 = vpop.xlane.xlu1 %875  ;;  %vm943_vm10 = vcmp.eq.f32.partialorder %v3717_v49, inf  ;;  %vm945_vm11 = vcmp.eq.f32.partialorder %v3717_v49, 0.0  ;;  %v946_v14 = vand.u32 2147483648, %v3717_v49 }
 0x17e   : > { %v873_v47 = vpop.xlane.xlu0 %872  ;;  %v921_v48 = vmul.f32 %v3081_v38, %v904_v22  ;;  %v3733_v51 = vmul.f32 0.032258064, %v876_v44 }
 0x17f   : > { %v3735_v55 = vmul.f32 0.032258064, %v873_v47 }
 0x180   : > { %v923_v53 = vsel %vm922_vm1, %v904_v22, %v921_v48  ;;  %3090 = vrsqrt.f32 %v3733_v51  ;;  %vm964_vm12 = vcmp.eq.f32.partialorder %v3733_v51, inf  ;;  %vm966_vm13 = vcmp.eq.f32.partialorder %v3733_v51, 0.0 }
 0x181   : > { %v3083_v59 = vpop.eup %3082  ;;  %v926_v62 = vsel %vm924_vm3, %v925_v43, %v923_v53  ;;  %3092 = vrsqrt.f32 %v3735_v55  ;;  %v882_v60 = vpop.xlane.xlu1 %881  ;;  %v967_v22 = vand.u32 2147483648, %v3733_v51  ;;  %vm957_vm14 = vcmp.eq.f32.partialorder %v3735_v55, inf }
 0x182   : > { %v879_v45 = vpop.xlane.xlu0 %878  ;;  %v3085_v7 = vpop.eup %3084  ;;  %v935_v13 = vmul.f32 %v3083_v59, %v906_v25  ;;  %v3746_v10 = vmul.f32 0.032258064, %v882_v60  ;;  %v1032_v26 = vadd.f32 1e-06, %v926_v62  ;;  %vm959_vm15 = vcmp.eq.f32.partialorder %v3735_v55, 0.0 }
 0x183   : > { %v928_v9 = vmul.f32 %v3085_v7, %v905_v8  ;;  %v3748_v12 = vmul.f32 0.032258064, %v879_v45  ;;  %v960_v31 = vand.u32 2147483648, %v3735_v55 }
 0x184   : > { %v937_v15 = vsel %vm936_vm4, %v906_v25, %v935_v13  ;;  %3094 = vrsqrt.f32 %v3746_v10  ;;  %vm978_vm2 = vcmp.eq.f32.partialorder %v3746_v10, inf  ;;  %vm980_vm1 = vcmp.eq.f32.partialorder %v3746_v10, 0.0 }
 0x185   : > { %v940_v17 = vsel %vm938_vm5, %v939_v56, %v937_v15  ;;  %v930_v27 = vsel %vm929_vm6, %v905_v8, %v928_v9  ;;  %v888_v16 = vpop.xlane.xlu1 %887  ;;  %3096 = vrsqrt.f32 %v3748_v12  ;;  %v981_v1 = vand.u32 2147483648, %v3746_v10 }
 0x186   : > { %v885_v29 = vpop.xlane.xlu0 %884  ;;  %v3087_v18 = vpop.eup %3086  ;;  %v1034_v19 = vadd.f32 1e-06, %v940_v17  ;;  %v933_v21 = vsel %vm931_vm7, %v932_v41, %v930_v27  ;;  %3098 = vrcp.f32 %v1032_v26  ;;  %v3771_v32 = vmul.f32 0.032258064, %v888_v16 }
 0x187   : > { %v3089_v23 = vpop.eup %3088  ;;  %v949_v25 = vmul.f32 %v3087_v18, %v3715_v2  ;;  %v1033_v11 = vadd.f32 1e-06, %v933_v21  ;;  %v3778_v47 = vmul.f32 0.032258064, %v885_v29  ;;  %vm971_vm3 = vcmp.eq.f32.partialorder %v3748_v12, inf }
 0x188   : > { %v942_v24 = vmul.f32 %v3089_v23, %v3717_v49  ;;  %3100 = vrcp.f32 %v1034_v19  ;;  %vm973_vm4 = vcmp.eq.f32.partialorder %v3748_v12, 0.0  ;;  %v974_v13 = vand.u32 2147483648, %v3748_v12 }
 0x189   : > { %v951_v8 = vsel %vm950_vm8, %v3715_v2, %v949_v25  ;;  %v894_v58 = vpop.xlane.xlu1 %893  ;;  %3102 = vrsqrt.f32 %v3771_v32  ;;  %vm992_vm5 = vcmp.eq.f32.partialorder %v3771_v32, inf  ;;  %vm994_vm6 = vcmp.eq.f32.partialorder %v3771_v32, 0.0 }
 0x18a   : > { %v891_v50 = vpop.xlane.xlu0 %890  ;;  %v3091_v38 = vpop.eup %3090  ;;  %v954_v43 = vsel %vm952_vm9, %v953_v63, %v951_v8  ;;  %v944_v44 = vsel %vm943_vm10, %v3717_v49, %v942_v24  ;;  %3104 = vrcp.f32 %v1033_v11  ;;  %v3785_v41 = vmul.f32 0.032258064, %v894_v58 }
 0x18b   : > { %v3093_v48 = vpop.eup %3092  ;;  %v1036_v56 = vadd.f32 1e-06, %v954_v43  ;;  %v947_v53 = vsel %vm945_vm11, %v946_v14, %v944_v44  ;;  %v963_v59 = vmul.f32 %v3091_v38, %v3733_v51  ;;  %v3801_v15 = vmul.f32 0.032258064, %v891_v50 }
 0x18c   : > { %v1035_v62 = vadd.f32 1e-06, %v947_v53  ;;  %v956_v2 = vmul.f32 %v3093_v48, %v3735_v55  ;;  %v995_v16 = vand.u32 2147483648, %v3771_v32  ;;  %vm985_vm7 = vcmp.eq.f32.partialorder %v3778_v47, inf }
 0x18d   : > { %3106 = vrcp.f32 %v1036_v56  ;;  %v965_v60 = vsel %vm964_vm12, %v3733_v51, %v963_v59  ;;  %v900_v51 = vpop.xlane.xlu1 %899  ;;  %vm987_vm8 = vcmp.eq.f32.partialorder %v3778_v47, 0.0  ;;  %v988_v19 = vand.u32 2147483648, %v3778_v47 }
 0x18e   : > { %v897_v49 = vpop.xlane.xlu0 %896  ;;  %3108 = vrcp.f32 %v1035_v62  ;;  %v968_v45 = vsel %vm966_vm13, %v967_v22, %v965_v60  ;;  %v958_v7 = vsel %vm957_vm14, %v3735_v55, %v956_v2  ;;  %v3095_v63 = vpop.eup %3094  ;;  %vm1006_vm9 = vcmp.eq.f32.partialorder %v3785_v41, inf }
 0x18f   : > { %v1038_v9 = vadd.f32 1e-06, %v968_v45  ;;  %v961_v26 = vsel %vm959_vm15, %v960_v31, %v958_v7  ;;  %3110 = vrsqrt.f32 %v3778_v47  ;;  %v977_v17 = vmul.f32 %v3095_v63, %v3746_v10  ;;  %v3097_v27 = vpop.eup %3096 }
 0x190   : > { %v1037_v14 = vadd.f32 1e-06, %v961_v26  ;;  %3112 = vrsqrt.f32 %v3785_v41  ;;  %v3099_v55 = vpop.eup %3098  ;;  %v970_v18 = vmul.f32 %v3097_v27, %v3748_v12  ;;  %v3819_v23 = vmul.f32 0.032258064, %v900_v51 }
 0x191   : > { %3114 = vrcp.f32 %v1038_v9  ;;  %v979_v29 = vsel %vm978_vm2, %v3746_v10, %v977_v17  ;;  %vm1008_vm10 = vcmp.eq.f32.partialorder %v3785_v41, 0.0  ;;  %v3825_v24 = vmul.f32 0.032258064, %v897_v49 }
 0x192   : > { %3116 = vrcp.f32 %v1037_v14  ;;  %v903_v21 = vpop.xlane.xlu0 %902  ;;  %v982_v22 = vsel %vm980_vm1, %v981_v1, %v979_v29  ;;  %v3101_v25 = vpop.eup %3100  ;;  %v972_v11 = vsel %vm971_vm3, %v3748_v12, %v970_v18  ;;  %v1009_v1 = vand.u32 2147483648, %v3785_v41 }
 0x193   : > { %3118 = vrsqrt.f32 %v3801_v15  ;;  %v1040_v31 = vadd.f32 1e-06, %v982_v22  ;;  %v3103_v8 = vpop.eup %3102  ;;  %v975_v10 = vsel %vm973_vm4, %v974_v13, %v972_v11  ;;  %v3831_v58 = vmul.f32 0.032258064, %v903_v21 }
 0x194   : > { %3120 = vrsqrt.f32 %v3819_v23  ;;  %v3105_v50 = vpop.eup %3104  ;;  %v1039_v38 = vadd.f32 1e-06, %v975_v10  ;;  %v991_v43 = vmul.f32 %v3103_v8, %v3771_v32  ;;  %vm999_vm11 = vcmp.eq.f32.partialorder %v3801_v15, inf }
 0x195   : > { %3122 = vrcp.f32 %v1040_v31  ;;  %vm1001_vm12 = vcmp.eq.f32.partialorder %v3801_v15, 0.0  ;;  %v1002_v48 = vand.u32 2147483648, %v3801_v15  ;;  %vm1020_vm13 = vcmp.eq.f32.partialorder %v3819_v23, inf }
 0x196   : > { %3124 = vrsqrt.f32 %v3825_v24  ;;  %v993_v56 = vsel %vm992_vm5, %v3771_v32, %v991_v43  ;;  %vm1022_vm14 = vcmp.eq.f32.partialorder %v3819_v23, 0.0  ;;  %v1023_v53 = vand.u32 2147483648, %v3819_v23 }
 0x197   : > { %v3107_v44 = vpop.eup %3106  ;;  %3126 = vrcp.f32 %v1039_v38  ;;  %v1016_v59 = vand.u32 2147483648, %v3825_v24  ;;  %v996_v2 = vsel %vm994_vm6, %v995_v16, %v993_v56  ;;  %vm1013_vm15 = vcmp.eq.f32.partialorder %v3825_v24, inf }
 0x198   : > { %v3109_v12 = vpop.eup %3108  ;;  %3128 = vrsqrt.f32 %v3831_v58  ;;  %v1030_v60 = vand.u32 2147483648, %v3831_v58  ;;  %v1064_v49 = vmul.f32 %v3099_v55, %v3498_v28  ;;  %v1042_v7 = vadd.f32 1e-06, %v996_v2 }
 0x199   : > { %v3111_v62 = vpop.eup %3110  ;;  %vm1015_vm2 = vcmp.eq.f32.partialorder %v3825_v24, 0.0  ;;  %v1065_v63 = vmul.f32 %v3105_v50, %v3509_v37  ;;  %v1066_v9 = vmul.f32 %v3101_v25, %v3505_v35  ;;  %vm1027_vm1 = vcmp.eq.f32.partialorder %v3831_v58, inf }
 0x19a   : > { %v3113_v45 = vpop.eup %3112  ;;  %v984_v13 = vmul.f32 %v3111_v62, %v3778_v47  ;;  %v1084_v14 = vmul.f32 %v3721_v33, %v1064_v49  ;;  %v1067_v17 = vmul.f32 %v3109_v12, %v3522_v42  ;;  %v1068_v28 = vmul.f32 %v3107_v44, %v3526_v52 }
 0x19b   : > { %v3115_v32 = vpop.eup %3114  ;;  %v1005_v26 = vmul.f32 %v3113_v45, %v3785_v41  ;;  %3130 = vrcp.f32 %v1042_v7  ;;  %vm1029_vm3 = vcmp.eq.f32.partialorder %v3831_v58, 0.0  ;;  %v1085_v35 = vmul.f32 %v3721_v33, %v1065_v63 }
 0x19c   : > { %v3117_v51 = vpop.eup %3116  ;;  %v986_v27 = vsel %vm985_vm7, %v3778_v47, %v984_v13  ;;  %v1086_v37 = vmul.f32 %v3721_v33, %v1066_v9  ;;  %v1104_v52 = vadd.f32 %v3731_v5, %v1084_v14  ;;  %v1087_v29 = vmul.f32 %v3721_v33, %v1067_v17 }
 0x19d   : > { %v3119_v16 = vpop.eup %3118  ;;  %v989_v55 = vsel %vm987_vm8, %v988_v19, %v986_v27  ;;  %v1007_v42 = vsel %vm1006_vm9, %v3785_v41, %v1005_v26  ;;  %v1105_v25 = vadd.f32 %v3731_v5, %v1085_v35  ;;  %v1088_v8 = vmul.f32 %v3721_v33, %v1068_v28 }
 0x19e   : > { %v1041_v18 = vadd.f32 1e-06, %v989_v55  ;;  %v1010_v21 = vsel %vm1008_vm10, %v1009_v1, %v1007_v42  ;;  %v998_v22 = vmul.f32 %v3119_v16, %v3801_v15  ;;  %v3121_v31 = vpop.eup %3120  ;;  %2832 = vmatprep.mubr.msk.f32.mxu0 %vm322_vm0, %v1104_v52  ;;  %2864 = vmatprep.mubr.msk.f32.mxu1 %vm322_vm0, %v1104_v52  ;;  %v1106_v47 = vadd.f32 %v3731_v5, %v1086_v37 }
 0x19f   : > { %v1044_v11 = vadd.f32 1e-06, %v1010_v21  ;;  %v1107_v19 = vadd.f32 %v3731_v5, %v1087_v29  ;;  %v3123_v10 = vpop.eup %3122  ;;  %v1019_v1 = vmul.f32 %v3121_v31, %v3819_v23  ;;  %2833 = vmatmul.mubr.msk.f32.vlgmr.msra.gmra.mrb[16].mxu0 %vm322_vm0, %v1105_v25  ;;  %2865 = vmatmul.mubr.msk.f32.vlgmr.msra.gmra.mrb[16].mxu1 %vm322_vm0, %v1105_v25  ;;  %v1069_v50 = vmul.f32 %v3117_v51, %v3537_v46 }
 0x1a0   : > { %3132 = vrcp.f32 %v1041_v18  ;;  %v1000_v41 = vsel %vm999_vm11, %v3801_v15, %v998_v22  ;;  %v3125_v38 = vpop.eup %3124  ;;  %2835 = vmatprep.mubr.msk.f32.mxu0 %vm322_vm0, %v1106_v47  ;;  %2867 = vmatprep.mubr.msk.f32.mxu1 %vm322_vm0, %v1106_v47  ;;  %v1108_v44 = vadd.f32 %v3731_v5, %v1088_v8  ;;  %v1070_v12 = vmul.f32 %v3115_v32, %v3541_v6 }
 0x1a1   : > { %3134 = vrcp.f32 %v1044_v11  ;;  %v1003_v43 = vsel %vm1001_vm12, %v1002_v48, %v1000_v41  ;;  %v3127_v56 = vpop.eup %3126  ;;  %v1021_v2 = vsel %vm1020_vm13, %v3819_v23, %v1019_v1  ;;  %v1012_v46 = vmul.f32 %v3125_v38, %v3825_v24  ;;  %3043 = vmatpush3.bf16.msra.mxu0 %v3710_v20 }
 0x1a2   : > { %v1043_v62 = vadd.f32 1e-06, %v1003_v43  ;;  %v1089_v49 = vmul.f32 %v3721_v33, %v1069_v50  ;;  %v3129_v15 = vpop.eup %3128  ;;  %v1024_v48 = vsel %vm1022_vm14, %v1023_v53, %v1021_v2  ;;  %v1090_v6 = vmul.f32 %v3721_v33, %v1070_v12  ;;  %3045 = vmatprep.subr.bf16.mxu0 %v3737_v61 }
 0x1a3   : > { %v1071_v45 = vmul.f32 %v3127_v56, %v3551_v36  ;;  %v1072_v7 = vmul.f32 %v3123_v10, %v3555_v39  ;;  %v1046_v13 = vadd.f32 1e-06, %v1024_v48  ;;  %v1014_v20 = vsel %vm1013_vm15, %v3825_v24, %v1012_v46  ;;  %2836 = vmatmul.mubr.msk.f32.gmra.mrb[18].mxu0 %vm322_vm0, %v1107_v19  ;;  %2868 = vmatmul.mubr.msk.f32.gmra.mrb[18].mxu1 %vm322_vm0, %v1107_v19  ;;  %v2539_v48 = vld [vmem:[%s4513_s3 + $0x88] sm:$0xff] }
 0x1a4   : > { %3136 = vrcp.f32 %v1043_v62  ;;  %v1026_v63 = vmul.f32 %v3129_v15, %v3831_v58  ;;  %v1017_v36 = vsel %vm1015_vm2, %v1016_v59, %v1014_v20  ;;  %2838 = vmatprep.mubr.msk.f32.mxu0 %vm322_vm0, %v1108_v44  ;;  %2870 = vmatprep.mubr.msk.f32.mxu1 %vm322_vm0, %v1108_v44  ;;  %v1109_v39 = vadd.f32 %v3731_v5, %v1089_v49  ;;  %v2538_v15 = vld [vmem:[%s4513_s3 + $0x80] sm:$0xff] }
 0x1a5   : > { %v1110_v23 = vadd.f32 %v3731_v5, %v1090_v6  ;;  %v3131_v53 = vpop.eup %3130  ;;  %3138 = vrcp.f32 %v1046_v13  ;;  %v1045_v9 = vadd.f32 1e-06, %v1017_v36  ;;  %v1091_v26 = vmul.f32 %v3721_v33, %v1071_v45  ;;  %3047 = vmatpush3.bf16.msra.mxu0 %v3737_v61  ;;  %v2540_v45 = vld [vmem:[%s4513_s3 + $0x90] sm:$0xff]  ;;  %v4011_v36 = vld [vmem:[%s4514_s4] sm:$0xff] }
 0x1a6   : > { %v1028_v32 = vsel %vm1027_vm1, %v3831_v58, %v1026_v63  ;;  %v1092_v59 = vmul.f32 %v3721_v33, %v1072_v7  ;;  %v1074_v14 = vmul.f32 %v3131_v53, %v3569_v4  ;;  %v3048_v6 = vpack.c.bf16 %v2539_v48, %v2538_v15  ;;  %v2541_v7 = vld [vmem:[%s4513_s3 + $0x98] sm:$0xff]  ;;  %4521 = vst [vmem:[#allocation3_spill] sm:$0xff] %v4011_v36 }
 0x1a7   : > { %v1031_v24 = vsel %vm1029_vm3, %v1030_v60, %v1028_v32  ;;  %3140 = vrcp.f32 %v1045_v9  ;;  %2839 = vmatmul.mubr.msk.f32.gmra.mrb[20].mxu0 %vm322_vm0, %v1109_v39  ;;  %2871 = vmatmul.mubr.msk.f32.gmra.mrb[20].mxu1 %vm322_vm0, %v1109_v39  ;;  %v1111_v28 = vadd.f32 %v3731_v5, %v1091_v26  ;;  %v3052_v13 = vpack.c.bf16 %v2541_v7, %v2540_v45 }
 0x1a8   : > { %v1047_v17 = vadd.f32 1e-06, %v1031_v24  ;;  %2841 = vmatprep.mubr.msk.f32.mxu0 %vm322_vm0, %v1110_v23  ;;  %2873 = vmatprep.mubr.msk.f32.mxu1 %vm322_vm0, %v1110_v23  ;;  %v1112_v61 = vadd.f32 %v3731_v5, %v1092_v59  ;;  %v1094_v60 = vmul.f32 %v3721_v33, %v1074_v14  ;;  %v1127_v20 = vsub.s32 1, %v3500_v30 }
 0x1a9   : > { %3049 = vmatprep.subr.bf16.mxu1 %v3048_v6  ;;  %v1329_v63 = vsub.s32 2, %v3500_v30 }
 0x1aa   : > { %v3133_v58 = vpop.eup %3132  ;;  %3142 = vrcp.f32 %v1047_v17  ;;  %v1114_v16 = vadd.f32 %v3731_v5, %v1094_v60  ;;  %3051 = vmatpush3.bf16.msra.mxu1 %v3048_v6  ;;  %v4014_v39 = vrot.slane %v4011_v36, %v1127_v20 }
 0x1ab   : > { %v3135_v51 = vpop.eup %3134  ;;  %v1073_v4 = vmul.f32 %v3133_v58, %v3565_v0  ;;  %2842 = vmatmul.mubr.msk.f32.gmra.mrb[22].mxu0 %vm322_vm0, %v1111_v28  ;;  %2874 = vmatmul.mubr.msk.f32.gmra.mrb[22].mxu1 %vm322_vm0, %v1111_v28  ;;  %v4017_v23 = vrot.slane %v4011_v36, %v1329_v63 }
 0x1ac   : > { %v1076_v27 = vmul.f32 %v3135_v51, %v3583_v40  ;;  %2844 = vmatprep.mubr.msk.f32.mxu0 %vm322_vm0, %v1112_v61  ;;  %2876 = vmatprep.mubr.msk.f32.mxu1 %vm322_vm0, %v1112_v61 }
 0x1ad   : > { %v1093_v35 = vmul.f32 %v3721_v33, %v1073_v4  ;;  %3053 = vmatprep.subr.bf16.mxu1 %v3052_v13 }
 0x1ae   : > { %v3137_v37 = vpop.eup %3136  ;;  %v1096_v55 = vmul.f32 %v3721_v33, %v1076_v27  ;;  %3055 = vmatpush3.bf16.msra.mxu1 %v3052_v13 }
 0x1af   : > { %v1113_v42 = vadd.f32 %v3731_v5, %v1093_v35  ;;  %v1075_v0 = vmul.f32 %v3137_v37, %v3579_v34  ;;  %v3139_v52 = vpop.eup %3138 }
 0x1b0   : > { %v1078_v29 = vmul.f32 %v3139_v52, %v3597_v3  ;;  %v1116_v21 = vadd.f32 %v3731_v5, %v1096_v55 }
 0x1b1   : > { %2845 = vmatmul.mubr.msk.f32.gmra.mrb[24].mxu0 %vm322_vm0, %v1113_v42  ;;  %2877 = vmatmul.mubr.msk.f32.gmra.mrb[24].mxu1 %vm322_vm0, %v1113_v42  ;;  %v1095_v40 = vmul.f32 %v3721_v33, %v1075_v0  ;;  %v3141_v18 = vpop.eup %3140 }
 0x1b2   : > { %2847 = vmatprep.mubr.msk.f32.mxu0 %vm322_vm0, %v1114_v16  ;;  %2879 = vmatprep.mubr.msk.f32.mxu1 %vm322_vm0, %v1114_v16  ;;  %v1077_v34 = vmul.f32 %v3141_v18, %v3593_v54  ;;  %v1098_v25 = vmul.f32 %v3721_v33, %v1078_v29 }
 0x1b3   : > { %v1115_v22 = vadd.f32 %v3731_v5, %v1095_v40 }
 0x1b4   : > { %v3143_v31 = vpop.eup %3142  ;;  %v1097_v3 = vmul.f32 %v3721_v33, %v1077_v34  ;;  %v1118_v47 = vadd.f32 %v3731_v5, %v1098_v25 }
 0x1b5   : > { %2848 = vmatmul.mubr.msk.f32.gmra.mrb[26].mxu0 %vm322_vm0, %v1115_v22  ;;  %2880 = vmatmul.mubr.msk.f32.gmra.mrb[26].mxu1 %vm322_vm0, %v1115_v22  ;;  %v1079_v11 = vmul.f32 %v3143_v31, %v3607_v57 }
 0x1b6   : > { %2850 = vmatprep.mubr.msk.f32.mxu0 %vm322_vm0, %v1116_v21  ;;  %2882 = vmatprep.mubr.msk.f32.mxu1 %vm322_vm0, %v1116_v21  ;;  %v1117_v19 = vadd.f32 %v3731_v5, %v1097_v3 }
 0x1b7   : > { %v1099_v54 = vmul.f32 %v3721_v33, %v1079_v11 }
 0x1b9   : > { %2851 = vmatmul.mubr.msk.f32.gmra.mrb[28].mxu0 %vm322_vm0, %v1117_v19  ;;  %2883 = vmatmul.mubr.msk.f32.gmra.mrb[28].mxu1 %vm322_vm0, %v1117_v19  ;;  %v1119_v8 = vadd.f32 %v3731_v5, %v1099_v54 }
 0x1ba   : > { %2853 = vmatprep.mubr.msk.f32.mxu0 %vm322_vm0, %v1118_v47  ;;  %2885 = vmatprep.mubr.msk.f32.mxu1 %vm322_vm0, %v1118_v47 }
 0x1bd   : > { %2854 = vmatmul.mubr.msk.f32.gmra.mrb[30].mxu0 %vm322_vm0, %v1119_v8  ;;  %2886 = vmatmul.mubr.msk.f32.gmra.mrb[30].mxu1 %vm322_vm0, %v1119_v8 }
 0x1e4   : > { %v2802_v57 = vpop.f32.mrb[0].mxu1 }
 0x1e5   : > { %v680_v10 = vpop.f32.mrb[1].mxu1 }
 0x1e6   : > { %2896 = vmatprep.mubr.msk.f32.mxu0 %vm322_vm0, %v680_v10 }
 0x1e7   : > { %2897 = vmatmul.mubr.msk.f32.vlgmr.msra.gmra.mrb[32].mxu0 %vm322_vm0, %v2802_v57 }
 0x1e8   : > { %v2805_v33 = vpop.f32.mrb[2].mxu1 }
 0x1e9   : > { %v690_v41 = vpop.f32.mrb[3].mxu1 }
 0x1ea   : > { %2899 = vmatprep.mubr.msk.f32.mxu0 %vm322_vm0, %v690_v41 }
 0x1eb   : > { %2900 = vmatmul.mubr.msk.f32.gmra.mrb[34].mxu0 %vm322_vm0, %v2805_v33 }
 0x1ec   : > { %v2808_v5 = vpop.f32.mrb[4].mxu1 }
 0x1ed   : > { %v700_v1 = vpop.f32.mrb[5].mxu1 }
 0x1ee   : > { %2902 = vmatprep.mubr.msk.f32.mxu0 %vm322_vm0, %v700_v1 }
 0x1ef   : > { %2903 = vmatmul.mubr.msk.f32.gmra.mrb[36].mxu0 %vm322_vm0, %v2808_v5 }
 0x1f0   : > { %v2811_v50 = vpop.f32.mrb[6].mxu1 }
 0x1f1   : > { %v710_v38 = vpop.f32.mrb[7].mxu1 }
 0x1f2   : > { %2905 = vmatprep.mubr.msk.f32.mxu0 %vm322_vm0, %v710_v38  ;;  %v2559_v38 = vld [vmem:[%s4513_s3 + $0xa8] sm:$0xff] }
 0x1f3   : > { %2906 = vmatmul.mubr.msk.f32.gmra.mrb[38].mxu0 %vm322_vm0, %v2811_v50  ;;  %v2558_v50 = vld [vmem:[%s4513_s3 + $0xa0] sm:$0xff] }
 0x1f4   : > { %v2814_v43 = vpop.f32.mrb[8].mxu1 }
 0x1f5   : > { %v720_v44 = vpop.f32.mrb[9].mxu1 }
 0x1f6   : > { %2908 = vmatprep.mubr.msk.f32.mxu0 %vm322_vm0, %v720_v44 }
 0x1f7   : > { %2909 = vmatmul.mubr.msk.f32.gmra.mrb[40].mxu0 %vm322_vm0, %v2814_v43  ;;  %v2560_v43 = vld [vmem:[%s4513_s3 + $0xb0] sm:$0xff] }
 0x1f8   : > { %v2817_v12 = vpop.f32.mrb[10].mxu1 }
 0x1f9   : > { %v730_v56 = vpop.f32.mrb[11].mxu1 }
 0x1fa   : > { %2911 = vmatprep.mubr.msk.f32.mxu0 %vm322_vm0, %v730_v56 }
 0x1fb   : > { %2912 = vmatmul.mubr.msk.f32.gmra.mrb[42].mxu0 %vm322_vm0, %v2817_v12 }
 0x1fc   : > { %v2820_v62 = vpop.f32.mrb[12].mxu1 }
 0x1fd   : > { %v740_v2 = vpop.f32.mrb[13].mxu1 }
 0x1fe   : > { %2914 = vmatprep.mubr.msk.f32.mxu0 %vm322_vm0, %v740_v2  ;;  %v4114_v2 = vpack.c.bf16 %v2559_v38, %v2558_v50 }
 0x1ff   : > { %2915 = vmatmul.mubr.msk.f32.gmra.mrb[44].mxu0 %vm322_vm0, %v2820_v62 }
 0x200   : > { %v2823_v46 = vpop.f32.mrb[14].mxu1  ;;  %3057 = vmatprep.subr.bf16.mxu0 %v4114_v2  ;;  %3064 = vmatprep.subr.bf16.mxu1 %v4114_v2 }
 0x201   : > { %v750_v49 = vpop.f32.mrb[15].mxu1  ;;  %3059 = vmatpush3.bf16.msra.mxu0 %v4114_v2 }
 0x202   : > { %2917 = vmatprep.mubr.msk.f32.mxu0 %vm322_vm0, %v750_v49 }
 0x203   : > { %2918 = vmatmul.mubr.msk.f32.gmra.mrb[46].mxu0 %vm322_vm0, %v2823_v46  ;;  %v2561_v46 = vld [vmem:[%s4513_s3 + $0xb8] sm:$0xff] }
 0x204   : > { %v4125_v48 = vpack.c.bf16 %v2561_v46, %v2560_v43 }
 0x206   : > { %3061 = vmatprep.subr.bf16.mxu0 %v4125_v48 }
 0x207   : > { %3063 = vmatpush3.bf16.msra.mxu0 %v4125_v48 }
 0x272   : > { %v2834_v53 = vpop.f32.mrb[16].mxu0  ;;  %v2866_v9 = vpop.f32.mrb[16].mxu1 }
 0x273   : > { %v4020_v32 = vadd.f32 %v2834_v53, %v4014_v39  ;;  %v4023_v26 = vadd.f32 %v2866_v9, %v4017_v23  ;;  %v1243_v24 = vpop.f32.mrb[17].mxu0  ;;  %v1397_v59 = vpop.f32.mrb[17].mxu1 }
 0x274   : > { %v4026_v14 = vadd.f32 %v1243_v24, %v4014_v39  ;;  %v4029_v17 = vadd.f32 %v1397_v59, %v4017_v23 }
 0x275   : > { %v4033_v28 = vmul.f32 %v4023_v26, %v4020_v32 }
 0x276   : > { %v4037_v61 = vmul.f32 %v4029_v17, %v4026_v14  ;;  %v2837_v58 = vpop.f32.mrb[18].mxu0  ;;  %v2869_v60 = vpop.f32.mrb[18].mxu1 }
 0x277   : > { %v4040_v51 = vadd.f32 %v2837_v58, %v4014_v39  ;;  %v4043_v4 = vadd.f32 %v2869_v60, %v4017_v23  ;;  %v1253_v27 = vpop.f32.mrb[19].mxu0  ;;  %v1407_v35 = vpop.f32.mrb[19].mxu1 }
 0x278   : > { %v4046_v37 = vadd.f32 %v1253_v27, %v4014_v39  ;;  %v4049_v16 = vadd.f32 %v1407_v35, %v4017_v23 }
 0x279   : > { %v4053_v55 = vmul.f32 %v4043_v4, %v4040_v51 }
 0x27a   : > { %v4057_v42 = vmul.f32 %v4049_v16, %v4046_v37  ;;  %v2840_v0 = vpop.f32.mrb[20].mxu0  ;;  %v2872_v52 = vpop.f32.mrb[20].mxu1 }
 0x27b   : > { %v4060_v40 = vadd.f32 %v2840_v0, %v4014_v39  ;;  %v4063_v29 = vadd.f32 %v2872_v52, %v4017_v23  ;;  %v1263_v18 = vpop.f32.mrb[21].mxu0  ;;  %v1417_v21 = vpop.f32.mrb[21].mxu1 }
 0x27c   : > { %v4066_v22 = vadd.f32 %v1263_v18, %v4014_v39  ;;  %v4069_v34 = vadd.f32 %v1417_v21, %v4017_v23 }
 0x27d   : > { %v4073_v25 = vmul.f32 %v4063_v29, %v4060_v40 }
 0x27e   : > { %v4077_v31 = vmul.f32 %v4069_v34, %v4066_v22  ;;  %v2843_v3 = vpop.f32.mrb[22].mxu0  ;;  %v2875_v11 = vpop.f32.mrb[22].mxu1 }
 0x27f   : > { %v4080_v47 = vadd.f32 %v2843_v3, %v4014_v39  ;;  %v4083_v19 = vadd.f32 %v2875_v11, %v4017_v23  ;;  %v1273_v54 = vpop.f32.mrb[23].mxu0  ;;  %v1427_v8 = vpop.f32.mrb[23].mxu1 }
 0x280   : > { %v4086_v57 = vadd.f32 %v1273_v54, %v4014_v39  ;;  %v4089_v10 = vadd.f32 %v1427_v8, %v4017_v23 }
 0x281   : > { %v4093_v33 = vmul.f32 %v4083_v19, %v4080_v47 }
 0x282   : > { %v4097_v41 = vmul.f32 %v4089_v10, %v4086_v57 }
 0x284   : > { %v2846_v5 = vpop.f32.mrb[24].mxu0  ;;  %v2878_v1 = vpop.f32.mrb[24].mxu1 }
 0x285   : > { %v4109_v44 = vadd.f32 %v2846_v5, %v4014_v39  ;;  %v4112_v12 = vadd.f32 %v2878_v1, %v4017_v23  ;;  %v1283_v56 = vpop.f32.mrb[25].mxu0  ;;  %v1437_v62 = vpop.f32.mrb[25].mxu1 }
 0x286   : > { %v4120_v49 = vadd.f32 %v1283_v56, %v4014_v39  ;;  %v4123_v15 = vadd.f32 %v1437_v62, %v4017_v23 }
 0x287   : > { %v4129_v6 = vmul.f32 %v4112_v12, %v4109_v44 }
 0x288   : > { %v4135_v45 = vmul.f32 %v4123_v15, %v4120_v49  ;;  %v2849_v7 = vpop.f32.mrb[26].mxu0  ;;  %v2881_v13 = vpop.f32.mrb[26].mxu1 }
 0x289   : > { %v4139_v20 = vadd.f32 %v2849_v7, %v4014_v39  ;;  %v4142_v63 = vadd.f32 %v2881_v13, %v4017_v23  ;;  %v1293_v53 = vpop.f32.mrb[27].mxu0  ;;  %v1447_v9 = vpop.f32.mrb[27].mxu1 }
 0x28a   : > { %v4146_v24 = vadd.f32 %v1293_v53, %v4014_v39  ;;  %v4149_v59 = vadd.f32 %v1447_v9, %v4017_v23  ;;  %v1483_v53 = vsub.s32 3, %v3500_v30 }
 0x28b   : > { %v4153_v58 = vmul.f32 %v4142_v63, %v4139_v20 }
 0x28c   : > { %v4157_v60 = vmul.f32 %v4149_v59, %v4146_v24  ;;  %v2852_v27 = vpop.f32.mrb[28].mxu0  ;;  %v2884_v35 = vpop.f32.mrb[28].mxu1  ;;  %v4202_v9 = vrot.slane %v4011_v36, %v1483_v53 }
 0x28d   : > { %v4161_v0 = vadd.f32 %v2852_v27, %v4014_v39  ;;  %v4164_v52 = vadd.f32 %v2884_v35, %v4017_v23  ;;  %v1303_v18 = vpop.f32.mrb[29].mxu0  ;;  %v1457_v21 = vpop.f32.mrb[29].mxu1 }
 0x28e   : > { %v4167_v3 = vadd.f32 %v1303_v18, %v4014_v39  ;;  %v4170_v11 = vadd.f32 %v1457_v21, %v4017_v23 }
 0x28f   : > { %v4174_v54 = vmul.f32 %v4164_v52, %v4161_v0 }
 0x290   : > { %v4178_v8 = vmul.f32 %v4170_v11, %v4167_v3  ;;  %v2855_v5 = vpop.f32.mrb[30].mxu0  ;;  %v2887_v1 = vpop.f32.mrb[30].mxu1 }
 0x291   : > { %v4181_v50 = vadd.f32 %v2855_v5, %v4014_v39  ;;  %v4184_v38 = vadd.f32 %v2887_v1, %v4017_v23  ;;  %v1313_v43 = vpop.f32.mrb[31].mxu0  ;;  %v1467_v56 = vpop.f32.mrb[31].mxu1 }
 0x292   : > { %v4187_v62 = vadd.f32 %v1313_v43, %v4014_v39  ;;  %v4190_v46 = vadd.f32 %v1467_v56, %v4017_v23 }
 0x293   : > { %v4194_v7 = vmul.f32 %v4184_v38, %v4181_v50 }
 0x294   : > { %v4198_v13 = vmul.f32 %v4190_v46, %v4187_v62 }
 0x2ba   : > { %v2898_v27 = vpop.f32.mrb[32].mxu0 }
 0x2bb   : > { %v4205_v39 = vadd.f32 %v2898_v27, %v4202_v9  ;;  %v1599_v35 = vpop.f32.mrb[33].mxu0 }
 0x2bc   : > { %v4208_v23 = vadd.f32 %v1599_v35, %v4202_v9 }
 0x2bd   : > { %v1679_v18 = vmul.f32 %v4205_v39, %v4020_v32 }
 0x2be   : > { %v1678_v5 = vmul.f32 %v4208_v23, %v4026_v14  ;;  %v2901_v43 = vpop.f32.mrb[34].mxu0 }
 0x2bf   : > { %v1711_v56 = vsub.f32 %v1679_v18, %v4033_v28  ;;  %v4220_v53 = vadd.f32 %v2901_v43, %v4202_v9  ;;  %v1609_v27 = vpop.f32.mrb[35].mxu0 }
 0x2c0   : > { %v1710_v35 = vsub.f32 %v1678_v5, %v4037_v61  ;;  %v4224_v32 = vadd.f32 %v1609_v27, %v4202_v9 }
 0x2c1   : > { %v2523_v36 = vmul.f32 -0.5, %v1711_v56  ;;  %v1681_v21 = vmul.f32 %v4220_v53, %v4040_v51 }
 0x2c2   : > { %v2522_v1 = vmul.f32 -0.5, %v1710_v35  ;;  %v1680_v28 = vmul.f32 %v4224_v32, %v4046_v37  ;;  %v1840_v18 = vsub.f32 %v4224_v32, %v4049_v16  ;;  %v2904_v43 = vpop.f32.mrb[36].mxu0 }
 0x2c3   : > { %v1760_v30 = vmul.f32 1.442695, %v2523_v36  ;;  %v1713_v61 = vsub.f32 %v1681_v21, %v4053_v55  ;;  %v4236_v5 = vadd.f32 %v2904_v43, %v4202_v9  ;;  %v1619_v56 = vpop.f32.mrb[37].mxu0 }
 0x2c4   : > { %v1758_v27 = vmul.f32 1.442695, %v2522_v1  ;;  %v1712_v51 = vsub.f32 %v1680_v28, %v4057_v42  ;;  %v4240_v14 = vadd.f32 %v1619_v56, %v4202_v9 }
 0x2c5   : > { %3144 = vpow2.f32 %v1760_v30  ;;  %v2525_v35 = vmul.f32 -0.5, %v1713_v61  ;;  %v1683_v37 = vmul.f32 %v4236_v5, %v4060_v40  ;;  %v1843_v36 = vsub.f32 %v4236_v5, %v4063_v29 }
 0x2c6   : > { %3146 = vpow2.f32 %v1758_v27  ;;  %v2524_v55 = vmul.f32 -0.5, %v1712_v51  ;;  %v1682_v21 = vmul.f32 %v4240_v14, %v4066_v22  ;;  %v1842_v1 = vsub.f32 %v4240_v14, %v4069_v34  ;;  %v2907_v42 = vpop.f32.mrb[38].mxu0 }
 0x2c7   : > { %v1764_v28 = vmul.f32 1.442695, %v2525_v35  ;;  %v1715_v43 = vsub.f32 %v1683_v37, %v4073_v25  ;;  %v4252_v30 = vadd.f32 %v2907_v42, %v4202_v9  ;;  %v1629_v61 = vpop.f32.mrb[39].mxu0 }
 0x2c8   : > { %v1762_v40 = vmul.f32 1.442695, %v2524_v55  ;;  %v1714_v56 = vsub.f32 %v1682_v21, %v4077_v31  ;;  %v4256_v27 = vadd.f32 %v1629_v61, %v4202_v9 }
 0x2c9   : > { %3148 = vpow2.f32 %v1764_v28  ;;  %v2527_v51 = vmul.f32 -0.5, %v1715_v43  ;;  %v1685_v22 = vmul.f32 %v4252_v30, %v4080_v47  ;;  %v1845_v35 = vsub.f32 %v4252_v30, %v4083_v19 }
 0x2ca   : > { %3150 = vpow2.f32 %v1762_v40  ;;  %v2526_v25 = vmul.f32 -0.5, %v1714_v56  ;;  %v1684_v37 = vmul.f32 %v4256_v27, %v4086_v57  ;;  %v2910_v31 = vpop.f32.mrb[40].mxu0 }
 0x2cb   : > { %v1768_v21 = vmul.f32 1.442695, %v2527_v51  ;;  %v1717_v42 = vsub.f32 %v1685_v22, %v4093_v33  ;;  %v4268_v28 = vadd.f32 %v2910_v31, %v4202_v9  ;;  %v1639_v43 = vpop.f32.mrb[41].mxu0 }
 0x2cc   : > { %v1766_v47 = vmul.f32 1.442695, %v2526_v25  ;;  %v1716_v61 = vsub.f32 %v1684_v37, %v4097_v41  ;;  %v4272_v40 = vadd.f32 %v1639_v43, %v4202_v9 }
 0x2cd   : > { %3152 = vpow2.f32 %v1768_v21  ;;  %v2529_v56 = vmul.f32 -0.5, %v1717_v42  ;;  %v1687_v57 = vmul.f32 %v4268_v28, %v4109_v44  ;;  %v4526_v30 = vsub.f32 %v4268_v28, %v4112_v12 }
 0x2ce   : > { %3154 = vpow2.f32 %v1766_v47  ;;  %v2528_v33 = vmul.f32 -0.5, %v1716_v61  ;;  %v1686_v22 = vmul.f32 %v4272_v40, %v4120_v49  ;;  %v2913_v41 = vpop.f32.mrb[42].mxu0 }
 0x2cf   : > { %v3145_v37 = vpop.eup %3144  ;;  %v1772_v31 = vmul.f32 1.442695, %v2529_v56  ;;  %v1719_v21 = vsub.f32 %v1687_v57, %v4129_v6  ;;  %v4284_v42 = vadd.f32 %v2913_v41, %v4202_v9  ;;  %v1649_v44 = vpop.f32.mrb[43].mxu0 }
 0x2d0   : > { %v3147_v43 = vpop.eup %3146  ;;  %v1791_v55 = vadd.f32 1.0, %v3145_v37  ;;  %v1770_v51 = vmul.f32 1.442695, %v2528_v33  ;;  %v1718_v47 = vsub.f32 %v1686_v22, %v4135_v45  ;;  %v4288_v61 = vadd.f32 %v1649_v44, %v4202_v9 }
 0x2d1   : > { %v1790_v49 = vadd.f32 1.0, %v3147_v43  ;;  %3156 = vpow2.f32 %v1772_v31  ;;  %v2531_v25 = vmul.f32 -0.5, %v1719_v21  ;;  %v1689_v56 = vmul.f32 %v4284_v42, %v4139_v20 }
 0x2d2   : > { %3158 = vrcp.f32 %v1791_v55  ;;  %v2530_v6 = vmul.f32 -0.5, %v1718_v47  ;;  %v1688_v41 = vmul.f32 %v4288_v61, %v4146_v24  ;;  %v2916_v33 = vpop.f32.mrb[44].mxu0  ;;  %v4528_v28 = vsub.f32 %v4284_v42, %v4142_v63 }
 0x2d3   : > { %v3149_v37 = vpop.eup %3148  ;;  %3160 = vrcp.f32 %v1790_v49  ;;  %v1776_v45 = vmul.f32 1.442695, %v2531_v25  ;;  %v1721_v22 = vsub.f32 %v1689_v56, %v4153_v58  ;;  %v1659_v21 = vpop.f32.mrb[45].mxu0  ;;  %v4301_v24 = vadd.f32 %v2916_v33, %v4202_v9 }
 0x2d4   : > { %v3151_v44 = vpop.eup %3150  ;;  %v1793_v20 = vadd.f32 1.0, %v3149_v37  ;;  %3162 = vpow2.f32 %v1770_v51  ;;  %v1774_v55 = vmul.f32 1.442695, %v2530_v6  ;;  %v1720_v43 = vsub.f32 %v1688_v41, %v4157_v60 }
 0x2d5   : > { %v1792_v47 = vadd.f32 1.0, %v3151_v44  ;;  %3164 = vpow2.f32 %v1776_v45  ;;  %v2533_v57 = vmul.f32 -0.5, %v1721_v22  ;;  %v4304_v58 = vadd.f32 %v1659_v21, %v4202_v9 }
 0x2d6   : > { %3166 = vrcp.f32 %v1793_v20  ;;  %v2532_v25 = vmul.f32 -0.5, %v1720_v43  ;;  %v2919_v49 = vpop.f32.mrb[46].mxu0  ;;  %v1691_v51 = vmul.f32 %v4301_v24, %v4161_v0  ;;  %v1851_v60 = vsub.f32 %v4301_v24, %v4164_v52 }
 0x2d7   : > { %v3153_v56 = vpop.eup %3152  ;;  %3168 = vrcp.f32 %v1792_v47  ;;  %v1780_v31 = vmul.f32 1.442695, %v2533_v57  ;;  %v1669_v6 = vpop.f32.mrb[47].mxu0  ;;  %v1690_v45 = vmul.f32 %v4304_v58, %v4167_v3  ;;  %v1850_v57 = vsub.f32 %v4304_v58, %v4170_v11 }
 0x2d8   : > { %v3155_v41 = vpop.eup %3154  ;;  %v1795_v37 = vadd.f32 1.0, %v3153_v56  ;;  %3170 = vpow2.f32 %v1774_v55  ;;  %v1778_v33 = vmul.f32 1.442695, %v2532_v25  ;;  %v1723_v21 = vsub.f32 %v1691_v51, %v4174_v54 }
 0x2d9   : > { %v1794_v22 = vadd.f32 1.0, %v3155_v41  ;;  %3172 = vpow2.f32 %v1780_v31  ;;  %v1722_v0 = vsub.f32 %v1690_v45, %v4178_v8  ;;  %v4317_v44 = vadd.f32 %v2919_v49, %v4202_v9 }
 0x2da   : > { %3174 = vrcp.f32 %v1795_v37  ;;  %v4320_v20 = vadd.f32 %v1669_v6, %v4202_v9  ;;  %v2535_v43 = vmul.f32 -0.5, %v1723_v21  ;;  %v4522_v8 = vsub.f32 %v4205_v39, %v4023_v26 }
 0x2db   : > { %v3157_v55 = vpop.eup %3156  ;;  %3176 = vrcp.f32 %v1794_v22  ;;  %v2534_v31 = vmul.f32 -0.5, %v1722_v0  ;;  %v1693_v54 = vmul.f32 %v4317_v44, %v4181_v50  ;;  %v1853_v9 = vsub.f32 %v4317_v44, %v4184_v38  ;;  %v4531_v44 = vld [vmem:[#allocation3_spill] sm:$0xff] }
 0x2dc   : > { %v3159_v3 = vpop.eup %3158  ;;  %v1797_v47 = vadd.f32 1.0, %v3157_v55  ;;  %3178 = vpow2.f32 %v1778_v33  ;;  %v1784_v49 = vmul.f32 1.442695, %v2535_v43  ;;  %v1692_v51 = vmul.f32 %v4320_v20, %v4187_v62 }
 0x2dd   : > { %v3161_v25 = vpop.eup %3160  ;;  %v1855_v56 = vmul.f32 %v3159_v3, %v4522_v8  ;;  %v4523_v41 = vsub.f32 %v4208_v23, %v4029_v17  ;;  %v1782_v33 = vmul.f32 1.442695, %v2534_v31  ;;  %v1725_v50 = vsub.f32 %v1693_v54, %v4194_v7 }
 0x2de   : > { %v3163_v6 = vpop.eup %3162  ;;  %3180 = vrcp.f32 %v1797_v47  ;;  %v1724_v21 = vsub.f32 %v1692_v51, %v4198_v13  ;;  %v4524_v23 = vsub.f32 %v4220_v53, %v4043_v4 }
 0x2df   : > { %v1854_v37 = vmul.f32 %v3161_v25, %v4523_v41  ;;  %v3165_v45 = vpop.eup %3164  ;;  %v1871_v39 = vadd.f32 %v1855_v56, %v4023_v26  ;;  %v1796_v22 = vadd.f32 1.0, %v3163_v6  ;;  %3182 = vpow2.f32 %v1784_v49 }
 0x2e0   : > { %v3167_v0 = vpop.eup %3166  ;;  %v1799_v62 = vadd.f32 1.0, %v3165_v45  ;;  %3184 = vpow2.f32 %v1782_v33  ;;  %v2537_v43 = vmul.f32 -0.5, %v1725_v50  ;;  %v2536_v7 = vmul.f32 -0.5, %v1724_v21 }
 0x2e1   : > { %v1870_v55 = vadd.f32 %v1854_v37, %v4029_v17  ;;  %v3169_v3 = vpop.eup %3168  ;;  %v1857_v47 = vmul.f32 %v3167_v0, %v4524_v23  ;;  %3186 = vrcp.f32 %v1796_v22  ;;  %v1852_v26 = vsub.f32 %v4320_v20, %v4190_v46 }
 0x2e2   : > { %v3171_v31 = vpop.eup %3170  ;;  %v1856_v13 = vmul.f32 %v3169_v3, %v1840_v18  ;;  %3188 = vrcp.f32 %v1799_v62  ;;  %v1788_v17 = vmul.f32 1.442695, %v2537_v43  ;;  %v1786_v53 = vmul.f32 1.442695, %v2536_v7 }
 0x2e3   : > { %2928 = vmatprep.mubr.msk.f32.mxu1 %vm322_vm0, %v1870_v55  ;;  %v3173_v54 = vpop.eup %3172  ;;  %v1873_v25 = vadd.f32 %v1857_v47, %v4043_v4  ;;  %v1798_v8 = vadd.f32 1.0, %v3171_v31  ;;  %v4527_v62 = vsub.f32 %v4272_v40, %v4123_v15  ;;  %v4529_v40 = vsub.f32 %v4288_v61, %v4149_v59 }
 0x2e4   : > { %2929 = vmatmul.mubr.msk.f32.vlgmr.msra.gmra.mrb[32].mxu1 %vm322_vm0, %v1871_v39  ;;  %v3175_v56 = vpop.eup %3174  ;;  %v1872_v49 = vadd.f32 %v1856_v13, %v4049_v16  ;;  %v1801_v51 = vadd.f32 1.0, %v3173_v54  ;;  %3190 = vpow2.f32 %v1788_v17 }
 0x2e5   : > { %3066 = vmatpush3.bf16.msra.mxu1 %v4114_v2  ;;  %v3177_v32 = vpop.eup %3176  ;;  %v1859_v18 = vmul.f32 %v3175_v56, %v1843_v36  ;;  %3192 = vrcp.f32 %v1798_v8  ;;  %v3210_v56 = vld [vmem:[%s3351_s12 + $0x8] sm:$0xff] }
 0x2e6   : > { %3065 = vmatprep.subr.bf16.mxu1 %v4125_v48  ;;  %v3179_v4 = vpop.eup %3178  ;;  %v1858_v6 = vmul.f32 %v3177_v32, %v1842_v1  ;;  %3194 = vrcp.f32 %v1801_v51  ;;  %2931 = vmatprep.mubr.msk.f32.mxu1 %vm322_vm0, %v1872_v49 }
 0x2e7   : > { %v1875_v16 = vadd.f32 %v1859_v18, %v4063_v29  ;;  %v1800_v41 = vadd.f32 1.0, %v3179_v4  ;;  %3196 = vpow2.f32 %v1786_v53  ;;  %v3211_v4 = vld [vmem:[%s3351_s12 + $0x10] sm:$0xff] }
 0x2e8   : > { %2932 = vmatmul.mubr.msk.f32.gmra.mrb[34].mxu1 %vm322_vm0, %v1873_v25  ;;  %v3181_v2 = vpop.eup %3180  ;;  %v1874_v5 = vadd.f32 %v1858_v6, %v4069_v34  ;;  %v4525_v34 = vsub.f32 %v4256_v27, %v4089_v10 }
 0x2e9   : > { %3067 = vmatpush3.bf16.msra.mxu1 %v4125_v48  ;;  %v3183_v36 = vpop.eup %3182  ;;  %v1861_v14 = vmul.f32 %v3181_v2, %v1845_v35  ;;  %3198 = vrcp.f32 %v1800_v41  ;;  %v3212_v41 = vld [vmem:[%s3351_s12 + $0x18] sm:$0xff] }
 0x2ea   : > { %v3185_v1 = vpop.eup %3184  ;;  %v1803_v37 = vadd.f32 1.0, %v3183_v36  ;;  %2934 = vmatprep.mubr.msk.f32.mxu1 %vm322_vm0, %v1874_v5 }
 0x2eb   : > { %v3187_v29 = vpop.eup %3186  ;;  %v1877_v33 = vadd.f32 %v1861_v14, %v4083_v19  ;;  %v1802_v50 = vadd.f32 1.0, %v3185_v1  ;;  %v3213_v1 = vld [vmem:[%s3351_s12 + $0x20] sm:$0xff] }
 0x2ec   : > { %2935 = vmatmul.mubr.msk.f32.gmra.mrb[36].mxu1 %vm322_vm0, %v1875_v16  ;;  %v3189_v45 = vpop.eup %3188  ;;  %v1860_v48 = vmul.f32 %v3187_v29, %v4525_v34  ;;  %3200 = vrcp.f32 %v1803_v37  ;;  %v3214_v29 = vld [vmem:[%s3351_s12 + $0x28] sm:$0xff] }
 0x2ed   : > { %v1863_v35 = vmul.f32 %v3189_v45, %v4526_v30  ;;  %3202 = vrcp.f32 %v1802_v50  ;;  %v3215_v30 = vld [vmem:[%s3351_s12 + $0x30] sm:$0xff] }
 0x2ee   : > { %v3191_v39 = vpop.eup %3190  ;;  %v1876_v22 = vadd.f32 %v1860_v48, %v4089_v10 }
 0x2ef   : > { %v3193_v21 = vpop.eup %3192  ;;  %v1879_v19 = vadd.f32 %v1863_v35, %v4112_v12  ;;  %v1805_v0 = vadd.f32 1.0, %v3191_v39 }
 0x2f0   : > { %v3195_v55 = vpop.eup %3194  ;;  %v1862_v43 = vmul.f32 %v3193_v21, %v4527_v62  ;;  %2937 = vmatprep.mubr.msk.f32.mxu1 %vm322_vm0, %v1876_v22  ;;  %v3216_v22 = vld [vmem:[%s3351_s12 + $0x38] sm:$0xff]  ;;  %v3217_v62 = vld [vmem:[%s3351_s12 + $0x40] sm:$0xff] }
 0x2f1   : > { %v3197_v27 = vpop.eup %3196  ;;  %v1865_v3 = vmul.f32 %v3195_v55, %v4528_v28  ;;  %3204 = vrcp.f32 %v1805_v0  ;;  %2938 = vmatmul.mubr.msk.f32.gmra.mrb[38].mxu1 %vm322_vm0, %v1877_v33  ;;  %v3218_v28 = vld [vmem:[%s3351_s12 + $0x48] sm:$0xff] }
 0x2f2   : > { %v1878_v10 = vadd.f32 %v1862_v43, %v4123_v15  ;;  %v1804_v23 = vadd.f32 1.0, %v3197_v27 }
 0x2f3   : > { %v3199_v12 = vpop.eup %3198  ;;  %v1881_v47 = vadd.f32 %v1865_v3, %v4142_v63 }
 0x2f4   : > { %v1864_v7 = vmul.f32 %v3199_v12, %v4529_v40  ;;  %3206 = vrcp.f32 %v1804_v23  ;;  %2940 = vmatprep.mubr.msk.f32.mxu1 %vm322_vm0, %v1878_v10 }
 0x2f5   : > { %2941 = vmatmul.mubr.msk.f32.gmra.mrb[40].mxu1 %vm322_vm0, %v1879_v19 }
 0x2f6   : > { %v3201_v42 = vpop.eup %3200  ;;  %v1880_v31 = vadd.f32 %v1864_v7, %v4149_v59 }
 0x2f7   : > { %v3203_v13 = vpop.eup %3202  ;;  %v1867_v15 = vmul.f32 %v3201_v42, %v1851_v60  ;;  %v4530_v60 = vld [vmem:[#allocation2_spill] sm:$0xff]  ;;  %v3220_v42 = vld [vmem:[%s3351_s12 + $0x58] sm:$0xff] }
 0x2f8   : > { %v1866_v63 = vmul.f32 %v3203_v13, %v1850_v57  ;;  %2943 = vmatprep.mubr.msk.f32.mxu1 %vm322_vm0, %v1880_v31  ;;  %v1893_v57 = vsub.s32 4, %v4530_v60 }
 0x2f9   : > { %v1883_v61 = vadd.f32 %v1867_v15, %v4164_v52  ;;  %2944 = vmatmul.mubr.msk.f32.gmra.mrb[42].mxu1 %vm322_vm0, %v1881_v47  ;;  %v3219_v47 = vld [vmem:[%s3351_s12 + $0x50] sm:$0xff] }
 0x2fa   : > { %v1882_v17 = vadd.f32 %v1866_v63, %v4170_v11 }
 0x2fb   : > { %v3205_v54 = vpop.eup %3204 }
 0x2fc   : > { %v1869_v59 = vmul.f32 %v3205_v54, %v1853_v9  ;;  %2946 = vmatprep.mubr.msk.f32.mxu1 %vm322_vm0, %v1882_v17  ;;  %v4417_v9 = vrot.slane %v4531_v44, %v1893_v57  ;;  %v3222_v54 = vld [vmem:[%s3351_s12 + $0x68] sm:$0xff]  ;;  %v3223_v57 = vld [vmem:[%s3351_s12 + $0x70] sm:$0xff] }
 0x2fd   : > { %2947 = vmatmul.mubr.msk.f32.gmra.mrb[44].mxu1 %vm322_vm0, %v1883_v61  ;;  %v3221_v61 = vld [vmem:[%s3351_s12 + $0x60] sm:$0xff] }
 0x2fe   : > { %v3207_v24 = vpop.eup %3206  ;;  %v1885_v58 = vadd.f32 %v1869_v59, %v4184_v38 }
 0x2ff   : > { %v1868_v52 = vmul.f32 %v3207_v24, %v1852_v26  ;;  %v3209_v26 = vld [vmem:[%s3351_s12] sm:$0xff] }
 0x301   : > { %v1884_v11 = vadd.f32 %v1868_v52, %v4190_v46 }
 0x303   : > { %2949 = vmatprep.mubr.msk.f32.mxu1 %vm322_vm0, %v1884_v11 }
 0x304   : > { %2950 = vmatmul.mubr.msk.f32.gmra.mrb[46].mxu1 %vm322_vm0, %v1885_v58 }
 0x3b7   : > { %v2930_v25 = vpop.f32.mrb[32].mxu1 }
 0x3b8   : > { %v2015_v8 = vadd.f32 %v2930_v25, %v4417_v9  ;;  %v2009_v38 = vpop.f32.mrb[33].mxu1 }
 0x3b9   : > { %v2010_v20 = vadd.f32 %v2009_v38, %v4417_v9 }
 0x3ba   : > { %v2089_v49 = vadd.f32 %v3210_v56, %v2015_v8  ;;  %v3224_v8 = vld [vmem:[%s3351_s12 + $0x78] sm:$0xff] }
 0x3bb   : > { %v2088_v53 = vadd.f32 %v3209_v26, %v2010_v20  ;;  %v2933_v46 = vpop.f32.mrb[34].mxu1  ;;  %v2111_v20 = vsub.s32 5, %v4530_v60 }
 0x3bc   : > { %v2025_v51 = vadd.f32 %v2933_v46, %v4417_v9  ;;  %v2019_v32 = vpop.f32.mrb[35].mxu1 }
 0x3bd   : > { %v2020_v18 = vadd.f32 %v2019_v32, %v4417_v9  ;;  %2960 = vmatprep.mubr.msk.f32.mxu0 %vm322_vm0, %v2088_v53  ;;  %v2112_v26 = vrot.slane %v4531_v44, %v2111_v20 }
 0x3be   : > { %2961 = vmatmul.mubr.msk.f32.vlgmr.msra.gmra.mrb[48].mxu0 %vm322_vm0, %v2089_v49  ;;  %v2091_v2 = vadd.f32 %v3212_v41, %v2025_v51 }
 0x3bf   : > { %v2090_v6 = vadd.f32 %v3211_v4, %v2020_v18  ;;  %v2936_v16 = vpop.f32.mrb[36].mxu1 }
 0x3c0   : > { %v2035_v5 = vadd.f32 %v2936_v16, %v4417_v9  ;;  %v2029_v36 = vpop.f32.mrb[37].mxu1 }
 0x3c1   : > { %v2030_v14 = vadd.f32 %v2029_v36, %v4417_v9  ;;  %2963 = vmatprep.mubr.msk.f32.mxu0 %vm322_vm0, %v2090_v6 }
 0x3c2   : > { %2964 = vmatmul.mubr.msk.f32.gmra.mrb[50].mxu0 %vm322_vm0, %v2091_v2  ;;  %v2093_v33 = vadd.f32 %v3214_v29, %v2035_v5 }
 0x3c3   : > { %v2092_v37 = vadd.f32 %v3213_v1, %v2030_v14 }
 0x3c4   : > { %v2939_v50 = vpop.f32.mrb[38].mxu1 }
 0x3c5   : > { %2966 = vmatprep.mubr.msk.f32.mxu0 %vm322_vm0, %v2092_v37  ;;  %v2045_v45 = vadd.f32 %v2939_v50, %v4417_v9  ;;  %v2039_v34 = vpop.f32.mrb[39].mxu1 }
 0x3c6   : > { %2967 = vmatmul.mubr.msk.f32.gmra.mrb[52].mxu0 %vm322_vm0, %v2093_v33  ;;  %v2040_v48 = vadd.f32 %v2039_v34, %v4417_v9 }
 0x3c7   : > { %v2095_v21 = vadd.f32 %v3216_v22, %v2045_v45 }
 0x3c8   : > { %v2094_v35 = vadd.f32 %v3215_v30, %v2040_v48  ;;  %v2942_v39 = vpop.f32.mrb[40].mxu1 }
 0x3c9   : > { %v2055_v19 = vadd.f32 %v2942_v39, %v4417_v9  ;;  %v2049_v0 = vpop.f32.mrb[41].mxu1 }
 0x3ca   : > { %v2050_v55 = vadd.f32 %v2049_v0, %v4417_v9  ;;  %2969 = vmatprep.mubr.msk.f32.mxu0 %vm322_vm0, %v2094_v35 }
 0x3cb   : > { %2970 = vmatmul.mubr.msk.f32.gmra.mrb[54].mxu0 %vm322_vm0, %v2095_v21  ;;  %v2097_v3 = vadd.f32 %v3218_v28, %v2055_v19 }
 0x3cc   : > { %v2096_v43 = vadd.f32 %v3217_v62, %v2050_v55  ;;  %v2945_v27 = vpop.f32.mrb[42].mxu1 }
 0x3cd   : > { %v2065_v10 = vadd.f32 %v2945_v27, %v4417_v9  ;;  %v2059_v23 = vpop.f32.mrb[43].mxu1 }
 0x3ce   : > { %v2060_v12 = vadd.f32 %v2059_v23, %v4417_v9  ;;  %2972 = vmatprep.mubr.msk.f32.mxu0 %vm322_vm0, %v2096_v43 }
 0x3cf   : > { %2973 = vmatmul.mubr.msk.f32.gmra.mrb[56].mxu0 %vm322_vm0, %v2097_v3  ;;  %v2099_v31 = vadd.f32 %v3220_v42, %v2065_v10 }
 0x3d0   : > { %v2098_v40 = vadd.f32 %v3219_v47, %v2060_v12  ;;  %v2948_v7 = vpop.f32.mrb[44].mxu1 }
 0x3d1   : > { %v2075_v13 = vadd.f32 %v2948_v7, %v4417_v9  ;;  %v2069_v15 = vpop.f32.mrb[45].mxu1 }
 0x3d2   : > { %v2070_v63 = vadd.f32 %v2069_v15, %v4417_v9  ;;  %2975 = vmatprep.mubr.msk.f32.mxu0 %vm322_vm0, %v2098_v40 }
 0x3d3   : > { %2976 = vmatmul.mubr.msk.f32.gmra.mrb[58].mxu0 %vm322_vm0, %v2099_v31  ;;  %v2101_v59 = vadd.f32 %v3222_v54, %v2075_v13 }
 0x3d4   : > { %v2100_v17 = vadd.f32 %v3221_v61, %v2070_v63 }
 0x3d6   : > { %2978 = vmatprep.mubr.msk.f32.mxu0 %vm322_vm0, %v2100_v17 }
 0x3d7   : > { %v2951_v24 = vpop.f32.mrb[46].mxu1  ;;  %2979 = vmatmul.mubr.msk.f32.gmra.mrb[60].mxu0 %vm322_vm0, %v2101_v59 }
 0x3d8   : > { %v2085_v58 = vadd.f32 %v2951_v24, %v4417_v9  ;;  %v2079_v52 = vpop.f32.mrb[47].mxu1 }
 0x3d9   : > { %v2080_v11 = vadd.f32 %v2079_v52, %v4417_v9 }
 0x3da   : > { %v2103_v38 = vadd.f32 %v3224_v8, %v2085_v58 }
 0x3db   : > { %v2102_v25 = vadd.f32 %v3223_v57, %v2080_v11 }
 0x3dd   : > { %2981 = vmatprep.mubr.msk.f32.mxu1 %vm322_vm0, %v2102_v25 }
 0x3de   : > { %2982 = vmatmul.mubr.msk.f32.vlgmr.msra.gmra.mrb[48].mxu1 %vm322_vm0, %v2103_v38 }
 0x491   : > { %v2962_v9 = vpop.f32.mrb[48].mxu0 }
 0x492   : > { %v2233_v53 = vadd.f32 %v2962_v9, %v2112_v26  ;;  %v2227_v46 = vpop.f32.mrb[49].mxu0 }
 0x493   : > { %v2228_v56 = vadd.f32 %v2227_v46, %v2112_v26 }
 0x494   : > { %2307 = vst.msk [vmem:[%s4473_s15 + $0x8] sm:$0xff] %vm322_vm0, %v2233_v53 }
 0x495   : > { %2306 = vst.msk [vmem:[%s4473_s15] sm:$0xff] %vm322_vm0, %v2228_v56  ;;  %v2965_v60 = vpop.f32.mrb[50].mxu0 }
 0x496   : > { %v2243_v44 = vadd.f32 %v2965_v60, %v2112_v26  ;;  %v2237_v49 = vpop.f32.mrb[51].mxu0 }
 0x497   : > { %v2238_v51 = vadd.f32 %v2237_v49, %v2112_v26 }
 0x498   : > { %2309 = vst.msk [vmem:[%s4473_s15 + $0x18] sm:$0xff] %vm322_vm0, %v2243_v44 }
 0x499   : > { %2308 = vst.msk [vmem:[%s4473_s15 + $0x10] sm:$0xff] %vm322_vm0, %v2238_v51  ;;  %v2968_v32 = vpop.f32.mrb[52].mxu0 }
 0x49a   : > { %v2253_v18 = vadd.f32 %v2968_v32, %v2112_v26  ;;  %v2247_v4 = vpop.f32.mrb[53].mxu0 }
 0x49b   : > { %v2248_v6 = vadd.f32 %v2247_v4, %v2112_v26 }
 0x49c   : > { %2311 = vst.msk [vmem:[%s4473_s15 + $0x28] sm:$0xff] %vm322_vm0, %v2253_v18 }
 0x49d   : > { %2310 = vst.msk [vmem:[%s4473_s15 + $0x20] sm:$0xff] %vm322_vm0, %v2248_v6 }
 0x49e   : > { %v2971_v16 = vpop.f32.mrb[54].mxu0 }
 0x49f   : > { %v2263_v41 = vadd.f32 %v2971_v16, %v2112_v26  ;;  %v2257_v2 = vpop.f32.mrb[55].mxu0 }
 0x4a0   : > { %v2258_v5 = vadd.f32 %v2257_v2, %v2112_v26 }
 0x4a1   : > { %2313 = vst.msk [vmem:[%s4473_s15 + $0x38] sm:$0xff] %vm322_vm0, %v2263_v41 }
 0x4a2   : > { %2312 = vst.msk [vmem:[%s4473_s15 + $0x30] sm:$0xff] %vm322_vm0, %v2258_v5  ;;  %v2974_v36 = vpop.f32.mrb[56].mxu0 }
 0x4a3   : > { %v2273_v14 = vadd.f32 %v2974_v36, %v2112_v26  ;;  %v2267_v1 = vpop.f32.mrb[57].mxu0 }
 0x4a4   : > { %v2268_v37 = vadd.f32 %v2267_v1, %v2112_v26 }
 0x4a5   : > { %2315 = vst.msk [vmem:[%s4473_s15 + $0x48] sm:$0xff] %vm322_vm0, %v2273_v14 }
 0x4a6   : > { %2314 = vst.msk [vmem:[%s4473_s15 + $0x40] sm:$0xff] %vm322_vm0, %v2268_v37  ;;  %v2977_v29 = vpop.f32.mrb[58].mxu0 }
 0x4a7   : > { %v2283_v33 = vadd.f32 %v2977_v29, %v2112_v26  ;;  %v2277_v50 = vpop.f32.mrb[59].mxu0 }
 0x4a8   : > { %v2278_v45 = vadd.f32 %v2277_v50, %v2112_v26 }
 0x4a9   : > { %2317 = vst.msk [vmem:[%s4473_s15 + $0x58] sm:$0xff] %vm322_vm0, %v2283_v33 }
 0x4aa   : > { %2316 = vst.msk [vmem:[%s4473_s15 + $0x50] sm:$0xff] %vm322_vm0, %v2278_v45  ;;  %v2980_v34 = vpop.f32.mrb[60].mxu0 }
 0x4ab   : > { %v2293_v48 = vadd.f32 %v2980_v34, %v2112_v26  ;;  %v2287_v30 = vpop.f32.mrb[61].mxu0 }
 0x4ac   : > { %v2288_v35 = vadd.f32 %v2287_v30, %v2112_v26 }
 0x4ad   : > { %2319 = vst.msk [vmem:[%s4473_s15 + $0x68] sm:$0xff] %vm322_vm0, %v2293_v48 }
 0x4ae   : > { %2318 = vst.msk [vmem:[%s4473_s15 + $0x60] sm:$0xff] %vm322_vm0, %v2288_v35 }
 0x4b1   : > { %v2983_v39 = vpop.f32.mrb[48].mxu1 }
 0x4b2   : > { %v2303_v22 = vadd.f32 %v2983_v39, %v2112_v26  ;;  %v2297_v21 = vpop.f32.mrb[49].mxu1 }
 0x4b3   : > { %v2298_v19 = vadd.f32 %v2297_v21, %v2112_v26 }
 0x4b4   : > { %2321 = vst.msk [vmem:[%s4473_s15 + $0x78] sm:$0xff] %vm322_vm0, %v2303_v22 }
 0x4b5   : > { %2320 = vst.msk [vmem:[%s4473_s15 + $0x70] sm:$0xff] %vm322_vm0, %v2298_v19 }
 0x4b6 PF: > { %s15_s18 = sadd.s32 1, %s3231_s18  }
 0x4b7   : > { %p12_p4 = scmp.ge.s32.totalorder %s15_s18, 4  }
 0x4b9   :  { %14 = sbr.rel (!%p12_p4) target bundleno = 1 (0x1), region = 81 }

</bundles_post_ra>
